<compile_context>
chip_gen: v6e
topology: v6e:2x2x1
jax: 0.10.0
libtpu: 0.0.40
codegen_flags: <defaults>
</compile_context>

<pallas_src>
import functools

import jax
import jax.numpy as jnp
from jax import lax
from jax.experimental import pallas as pl
from jax.experimental.pallas import tpu as pltpu

BN_EPS = 1e-5
LANE = 128
VMEM_LIMIT_BYTES = 48 * 1024 * 1024  # > 16/32 MiB scoped defaults, < v7x 64 MiB physical


def _round_up(x, m):
    return (x + m - 1) // m * m


def _pick_block_rows(h, w, target_rows=2048):
    """Largest divisor `th` of h with th*w <= target_rows and th*w % 8 == 0."""
    best = None
    for th in range(1, h + 1):
        if h % th == 0 and th * w <= target_rows and (th * w) % 8 == 0:
            best = th
    if best is None:
        # TODO(synk): shapes with no sublane-aligned row block fall back to
        # whole-image tiles.
        best = h
    return best


def _conv_stats_kernel(xblk_ref, wf_ref, z_ref, stats_ref):
    """Pass 1: fused depthwise+pointwise conv (single MXU matmul) + BN partial sums.

    xblk_ref : (1, th+2, W+2, Cin_pad)  zero-haloed NHWC tile
    wf_ref   : (9*Cin_pad, Cout_pad)    fused (depthwise x pointwise) weights
    z_ref    : (th*W, Cout_pad)         pre-BN activations for this tile
    stats_ref: (1, 8, Cout_pad)         row0 = sum(z), row1 = sum(z^2)
    """
    x = xblk_ref[0]                              # (th+2, W+2, Cp)
    thp2, wp2, cp = x.shape
    th, w = thp2 - 2, wp2 - 2

    # Only 3 sublane-shifted views along W; reuse them for every kh.
    xw = [x[:, kw:kw + w, :] for kw in range(3)]  # each (th+2, W, Cp)

    # im2col: 9 shifted windows concatenated along the (128-aligned) lane axis.
    cols = []
    for kh in range(3):
        for kw in range(3):
            cols.append(xw[kw][kh:kh + th])       # (th, W, Cp)
    im2col = jnp.concatenate(cols, axis=-1).reshape(th * w, 9 * cp)

    # Single MXU matmul with contraction depth K = 9*Cin_pad.
    z = jnp.dot(im2col, wf_ref[...], preferred_element_type=jnp.float32)
    z_ref[...] = z

    # BN partial sums for this tile (global stats reduced in the wrapper).
    s1 = jnp.sum(z, axis=0, keepdims=True)
    s2 = jnp.sum(z * z, axis=0, keepdims=True)
    pad = jnp.zeros((6, z.shape[1]), jnp.float32)
    stats_ref[0] = jnp.concatenate([s1, s2, pad], axis=0)


def _bn_relu_kernel(z_ref, scale_ref, shift_ref, o_ref):
    """Pass 2: out = relu(z * scale + shift) with folded BN parameters."""
    o_ref[...] = jnp.maximum(z_ref[...] * scale_ref[...] + shift_ref[...], 0.0)


@functools.partial(jax.jit, static_argnames=("block_rows",))
def depthwise_separable_conv(x_nchw, dw_weight, pw_weight, gamma, beta,
                             *, block_rows=None):
    """x_nchw: (N, Cin, H, W); dw_weight: (Cin,1,3,3); pw_weight: (Cout,Cin,1,1)."""
    n, cin, h, w = x_nchw.shape
    cout = pw_weight.shape[0]
    cin_p = _round_up(cin, LANE)
    cout_p = _round_up(cout, LANE)

    th = block_rows if block_rows is not None else _pick_block_rows(h, w)
    assert h % th == 0, "row-block size must divide H"
    hb = h // th
    num_tiles = n * hb
    rows_per_tile = th * w

    # --- glue (fused by XLA inside this jit): NCHW -> NHWC, halo + lane pad ---
    x_nhwc = jnp.transpose(x_nchw, (0, 2, 3, 1)).astype(jnp.float32)
    x_pad = jnp.pad(x_nhwc, ((0, 0), (1, 1), (1, 1), (0, cin_p - cin)))
    # Overlapping row blocks: each tile carries its own 2-row halo.
    row_idx = jnp.arange(hb)[:, None] * th + jnp.arange(th + 2)[None, :]
    x_blocks = x_pad[:, row_idx]                       # (N, HB, th+2, W+2, Cp)
    x_blocks = x_blocks.reshape(num_tiles, th + 2, w + 2, cin_p)

    # Fused weights: W_fused[tap*Cin_p + ci, co] = dw[ci, tap] * pw[co, ci]
    dw = dw_weight.reshape(cin, 9).astype(jnp.float32)          # tap = kh*3+kw
    pw = pw_weight.reshape(cout, cin).astype(jnp.float32)
    wf = dw.T[:, :, None] * pw.T[None, :, :]                    # (9, Cin, Cout)
    wf = jnp.pad(wf, ((0, 0), (0, cin_p - cin), (0, cout_p - cout)))
    wf = wf.reshape(9 * cin_p, cout_p)

    # --- pass 1: conv + per-tile BN partials (pipelined over tiles) ---
    z, stats = pl.pallas_call(
        _conv_stats_kernel,
        out_shape=(
            jax.ShapeDtypeStruct((num_tiles * rows_per_tile, cout_p), jnp.float32),
            jax.ShapeDtypeStruct((num_tiles, 8, cout_p), jnp.float32),
        ),
        grid=(num_tiles,),
        in_specs=[
            pl.BlockSpec((1, th + 2, w + 2, cin_p), lambda t: (t, 0, 0, 0)),
            pl.BlockSpec((9 * cin_p, cout_p), lambda t: (0, 0)),
        ],
        out_specs=(
            pl.BlockSpec((rows_per_tile, cout_p), lambda t: (t, 0)),
            pl.BlockSpec((1, 8, cout_p), lambda t: (t, 0, 0)),
        ),
        compiler_params=pltpu.CompilerParams(
            dimension_semantics=("parallel",),
            vmem_limit_bytes=VMEM_LIMIT_BYTES),
    )(x_blocks, wf)

    # --- tiny global BN reduction (over num_tiles partials) in plain XLA ---
    count = jnp.float32(n * h * w)
    s1 = jnp.sum(stats[:, 0, :], axis=0)
    s2 = jnp.sum(stats[:, 1, :], axis=0)
    mean = s1 / count
    var = jnp.maximum(s2 / count - mean * mean, 0.0)
    rstd = lax.rsqrt(var + BN_EPS)
    g = jnp.pad(gamma.astype(jnp.float32), (0, cout_p - cout))
    b = jnp.pad(beta.astype(jnp.float32), (0, cout_p - cout))
    scale = (g * rstd).reshape(1, cout_p)
    shift = (b - mean * g * rstd).reshape(1, cout_p)

    # --- pass 2: normalize + ReLU (pipelined, lane-dense stores) ---
    out_flat = pl.pallas_call(
        _bn_relu_kernel,
        out_shape=jax.ShapeDtypeStruct((num_tiles * rows_per_tile, cout_p), jnp.float32),
        grid=(num_tiles,),
        in_specs=[
            pl.BlockSpec((rows_per_tile, cout_p), lambda t: (t, 0)),
            pl.BlockSpec((1, cout_p), lambda t: (0, 0)),
            pl.BlockSpec((1, cout_p), lambda t: (0, 0)),
        ],
        out_specs=pl.BlockSpec((rows_per_tile, cout_p), lambda t: (t, 0)),
        compiler_params=pltpu.CompilerParams(
            dimension_semantics=("parallel",),
            vmem_limit_bytes=VMEM_LIMIT_BYTES),
    )(z, scale, shift)

    # --- glue: strip channel padding, (N*H*W, Cout) -> NCHW ---
    out = out_flat[:, :cout].reshape(n, h, w, cout)
    return jnp.transpose(out, (0, 3, 1, 2))


def _reference(x_nchw, dw_weight, pw_weight, gamma, beta):
    cin = x_nchw.shape[1]
    dw = lax.conv_general_dilated(
        x_nchw, dw_weight, window_strides=(1, 1), padding=((1, 1), (1, 1)),
        dimension_numbers=("NCHW", "OIHW", "NCHW"), feature_group_count=cin)
    pw = lax.conv_general_dilated(
        dw, pw_weight, window_strides=(1, 1), padding="VALID",
        dimension_numbers=("NCHW", "OIHW", "NCHW"))
    mean = jnp.mean(pw, axis=(0, 2, 3), keepdims=True)
    var = jnp.mean((pw - mean) ** 2, axis=(0, 2, 3), keepdims=True)
    bn = (pw - mean) * lax.rsqrt(var + BN_EPS)
    bn = bn * gamma.reshape(1, -1, 1, 1) + beta.reshape(1, -1, 1, 1)
    return jnp.maximum(bn, 0.0)


if __name__ == "__main__":
    N, CIN, COUT, H, W = 2, 4, 8, 16, 16

    key = jax.random.PRNGKey(0)
    k_x, k_dw, k_pw = jax.random.split(key, 3)

    x = jax.random.normal(k_x, (N, CIN, H, W), dtype=jnp.float32)
    dw_weight = jax.random.normal(k_dw, (CIN, 1, 3, 3), dtype=jnp.float32) * 0.3
    pw_weight = jax.random.normal(k_pw, (COUT, CIN, 1, 1), dtype=jnp.float32) * 0.3
    gamma = jnp.ones((COUT,), jnp.float32)   # BatchNorm2d default init
    beta = jnp.zeros((COUT,), jnp.float32)

    # block_rows=8 -> 2 row-blocks per image (4 grid tiles): exercises the
    # multi-tile pipeline and the cross-tile BatchNorm accumulation path.
    out = depthwise_separable_conv(x, dw_weight, pw_weight, gamma, beta,
                                   block_rows=8)
    out = jax.block_until_ready(out)

    ref = _reference(x, dw_weight, pw_weight, gamma, beta)
    assert out.shape == (N, COUT, H, W)
    assert jnp.allclose(out, ref, atol=5e-4, rtol=5e-4), "mismatch vs. reference"

    print("KERNEL_OK")
</pallas_src>

<mosaic_0001>
module attributes {stable_mosaic.version = 11 : i64} {
  func.func @_bn_relu_kernel(%arg0: i32, %arg1: memref<128x128xf32, #tpu.memory_space<vmem>>, %arg2: memref<1x128xf32, #tpu.memory_space<vmem>>, %arg3: memref<1x128xf32, #tpu.memory_space<vmem>>, %arg4: memref<128x128xf32, #tpu.memory_space<vmem>>) attributes {dimension_semantics = [#tpu.dimension_semantics<parallel>], iteration_bounds = array<i64: 4>, scalar_prefetch = 0 : i64, scratch_operands = 0 : i64, tpu.core_type = #tpu.core_type<tc>, window_params = [{transform_indices = @transform_0, window_bounds = array<i64: 128, 128>}, {pipeline_mode = #tpu.pipeline_mode<synchronous>, transform_indices = @transform_1, window_bounds = array<i64: 1, 128>}, {pipeline_mode = #tpu.pipeline_mode<synchronous>, transform_indices = @transform_2, window_bounds = array<i64: 1, 128>}, {transform_indices = @transform_3, window_bounds = array<i64: 128, 128>}]} {
    %c0 = arith.constant 0 : index
    %c0_0 = arith.constant 0 : index
    %0 = vector.load %arg1[%c0, %c0_0] : memref<128x128xf32, #tpu.memory_space<vmem>>, vector<128x128xf32>
    %c0_1 = arith.constant 0 : index
    %c0_2 = arith.constant 0 : index
    %1 = vector.load %arg2[%c0_1, %c0_2] : memref<1x128xf32, #tpu.memory_space<vmem>>, vector<1x128xf32>
    %2 = vector.broadcast %1 : vector<1x128xf32> to vector<128x128xf32>
    %3 = arith.mulf %0, %2 : vector<128x128xf32>
    %c0_3 = arith.constant 0 : index
    %c0_4 = arith.constant 0 : index
    %4 = vector.load %arg3[%c0_3, %c0_4] : memref<1x128xf32, #tpu.memory_space<vmem>>, vector<1x128xf32>
    %5 = vector.broadcast %4 : vector<1x128xf32> to vector<128x128xf32>
    %6 = arith.addf %3, %5 : vector<128x128xf32>
    %cst = arith.constant 0.000000e+00 : f32
    %7 = vector.broadcast %cst : f32 to vector<128x128xf32>
    %8 = arith.maximumf %6, %7 : vector<128x128xf32>
    %c0_5 = arith.constant 0 : index
    %c0_6 = arith.constant 0 : index
    %9 = vector.load %arg4[%c0_5, %c0_6] : memref<128x128xf32, #tpu.memory_space<vmem>>, vector<128x128xf32>
    tpu.vector_store %arg4[%c0_5, %c0_6], %8 {strides = array<i32>} : memref<128x128xf32, #tpu.memory_space<vmem>>, vector<128x128xf32>,
    return
  }
  func.func @transform_0(%arg0: i32) -> (i32, i32) {
    %c0_i32 = arith.constant 0 : i32
    %c0_i32_0 = arith.constant 0 : i32
    return %arg0, %c0_i32 : i32, i32
  }
  func.func @transform_1(%arg0: i32) -> (i32, i32) {
    %c0_i32 = arith.constant 0 : i32
    %c0_i32_0 = arith.constant 0 : i32
    %c0_i32_1 = arith.constant 0 : i32
    return %c0_i32, %c0_i32_0 : i32, i32
  }
  func.func @transform_2(%arg0: i32) -> (i32, i32) {
    %c0_i32 = arith.constant 0 : i32
    %c0_i32_0 = arith.constant 0 : i32
    %c0_i32_1 = arith.constant 0 : i32
    return %c0_i32, %c0_i32_0 : i32, i32
  }
  func.func @transform_3(%arg0: i32) -> (i32, i32) {
    %c0_i32 = arith.constant 0 : i32
    %c0_i32_0 = arith.constant 0 : i32
    return %arg0, %c0_i32 : i32, i32
  }
}

module attributes {stable_mosaic.version = 11 : i64} {
  func.func @_conv_stats_kernel(%arg0: i32, %arg1: memref<1x10x18x128xf32, #tpu.memory_space<vmem>>, %arg2: memref<1152x128xf32, #tpu.memory_space<vmem>>, %arg3: memref<128x128xf32, #tpu.memory_space<vmem>>, %arg4: memref<1x8x128xf32, #tpu.memory_space<vmem>>) attributes {dimension_semantics = [#tpu.dimension_semantics<parallel>], iteration_bounds = array<i64: 4>, scalar_prefetch = 0 : i64, scratch_operands = 0 : i64, tpu.core_type = #tpu.core_type<tc>, window_params = [{transform_indices = @transform_0, window_bounds = array<i64: 1, 10, 18, 128>}, {pipeline_mode = #tpu.pipeline_mode<synchronous>, transform_indices = @transform_1, window_bounds = array<i64: 1152, 128>}, {transform_indices = @transform_2, window_bounds = array<i64: 128, 128>}, {transform_indices = @transform_3, window_bounds = array<i64: 1, 8, 128>}]} {
    %c0 = arith.constant 0 : index
    %c0_0 = arith.constant 0 : index
    %c0_1 = arith.constant 0 : index
    %c0_2 = arith.constant 0 : index
    %0 = vector.load %arg1[%c0, %c0_0, %c0_1, %c0_2] : memref<1x10x18x128xf32, #tpu.memory_space<vmem>>, vector<1x10x18x128xf32>
    %1 = vector.shape_cast %0 : vector<1x10x18x128xf32> to vector<10x18x128xf32>
    %2 = vector.extract_strided_slice %1 {offsets = [0, 0, 0], sizes = [10, 16, 128], strides = [1, 1, 1]} : vector<10x18x128xf32> to vector<10x16x128xf32>
    %3 = vector.extract_strided_slice %1 {offsets = [0, 1, 0], sizes = [10, 16, 128], strides = [1, 1, 1]} : vector<10x18x128xf32> to vector<10x16x128xf32>
    %4 = vector.extract_strided_slice %1 {offsets = [0, 2, 0], sizes = [10, 16, 128], strides = [1, 1, 1]} : vector<10x18x128xf32> to vector<10x16x128xf32>
    %5 = vector.extract_strided_slice %2 {offsets = [0, 0, 0], sizes = [8, 16, 128], strides = [1, 1, 1]} : vector<10x16x128xf32> to vector<8x16x128xf32>
    %6 = vector.extract_strided_slice %3 {offsets = [0, 0, 0], sizes = [8, 16, 128], strides = [1, 1, 1]} : vector<10x16x128xf32> to vector<8x16x128xf32>
    %7 = vector.extract_strided_slice %4 {offsets = [0, 0, 0], sizes = [8, 16, 128], strides = [1, 1, 1]} : vector<10x16x128xf32> to vector<8x16x128xf32>
    %8 = vector.extract_strided_slice %2 {offsets = [1, 0, 0], sizes = [8, 16, 128], strides = [1, 1, 1]} : vector<10x16x128xf32> to vector<8x16x128xf32>
    %9 = vector.extract_strided_slice %3 {offsets = [1, 0, 0], sizes = [8, 16, 128], strides = [1, 1, 1]} : vector<10x16x128xf32> to vector<8x16x128xf32>
    %10 = vector.extract_strided_slice %4 {offsets = [1, 0, 0], sizes = [8, 16, 128], strides = [1, 1, 1]} : vector<10x16x128xf32> to vector<8x16x128xf32>
    %11 = vector.extract_strided_slice %2 {offsets = [2, 0, 0], sizes = [8, 16, 128], strides = [1, 1, 1]} : vector<10x16x128xf32> to vector<8x16x128xf32>
    %12 = vector.extract_strided_slice %3 {offsets = [2, 0, 0], sizes = [8, 16, 128], strides = [1, 1, 1]} : vector<10x16x128xf32> to vector<8x16x128xf32>
    %13 = vector.extract_strided_slice %4 {offsets = [2, 0, 0], sizes = [8, 16, 128], strides = [1, 1, 1]} : vector<10x16x128xf32> to vector<8x16x128xf32>
    %14 = tpu.concatenate %5, %6, %7, %8, %9, %10, %11, %12, %13 in 2 : vector<8x16x128xf32>, vector<8x16x128xf32>, vector<8x16x128xf32>, vector<8x16x128xf32>, vector<8x16x128xf32>, vector<8x16x128xf32>, vector<8x16x128xf32>, vector<8x16x128xf32>, vector<8x16x128xf32> -> vector<8x16x1152xf32>
    %15 = vector.shape_cast %14 : vector<8x16x1152xf32> to vector<128x1152xf32>
    %c0_3 = arith.constant 0 : index
    %c0_4 = arith.constant 0 : index
    %16 = vector.load %arg2[%c0_3, %c0_4] : memref<1152x128xf32, #tpu.memory_space<vmem>>, vector<1152x128xf32>
    %cst = arith.constant dense<0.000000e+00> : vector<128x128xf32>
    %17 = tpu.matmul %15, %16, %cst {dimension_numbers = #tpu.dot_dimension_numbers<[1], [0], [0], [1], [0, 0, 1, 1], [], []>} : vector<128x1152xf32>, vector<1152x128xf32>, vector<128x128xf32> -> vector<128x128xf32>
    %c0_5 = arith.constant 0 : index
    %c0_6 = arith.constant 0 : index
    %18 = vector.load %arg3[%c0_5, %c0_6] : memref<128x128xf32, #tpu.memory_space<vmem>>, vector<128x128xf32>
    tpu.vector_store %arg3[%c0_5, %c0_6], %17 {strides = array<i32>} : memref<128x128xf32, #tpu.memory_space<vmem>>, vector<128x128xf32>,
    %cst_7 = arith.constant dense<0.000000e+00> : vector<128xf32>
    %19 = vector.multi_reduction <add>, %17, %cst_7 [0] : vector<128x128xf32> to vector<128xf32>
    %20 = vector.shape_cast %19 : vector<128xf32> to vector<1x128xf32>
    %21 = arith.mulf %17, %17 : vector<128x128xf32>
    %cst_8 = arith.constant dense<0.000000e+00> : vector<128xf32>
    %22 = vector.multi_reduction <add>, %21, %cst_8 [0] : vector<128x128xf32> to vector<128xf32>
    %23 = vector.shape_cast %22 : vector<128xf32> to vector<1x128xf32>
    %cst_9 = arith.constant 0.000000e+00 : f32
    %24 = vector.broadcast %cst_9 : f32 to vector<6x128xf32>
    %25 = tpu.concatenate %20, %23, %24 in 0 : vector<1x128xf32>, vector<1x128xf32>, vector<6x128xf32> -> vector<8x128xf32>
    %c0_10 = arith.constant 0 : index
    %c0_11 = arith.constant 0 : index
    %c0_12 = arith.constant 0 : index
    %26 = vector.load %arg4[%c0_10, %c0_11, %c0_12] : memref<1x8x128xf32, #tpu.memory_space<vmem>>, vector<1x8x128xf32>
    %27 = vector.shape_cast %26 : vector<1x8x128xf32> to vector<8x128xf32>
    %28 = vector.shape_cast %25 : vector<8x128xf32> to vector<1x8x128xf32>
    tpu.vector_store %arg4[%c0_10, %c0_11, %c0_12], %28 {strides = array<i32>} : memref<1x8x128xf32, #tpu.memory_space<vmem>>, vector<1x8x128xf32>,
    return
  }
  func.func @transform_0(%arg0: i32) -> (i32, i32, i32, i32) {
    %c0_i32 = arith.constant 0 : i32
    %c0_i32_0 = arith.constant 0 : i32
    %c0_i32_1 = arith.constant 0 : i32
    %c0_i32_2 = arith.constant 0 : i32
    return %arg0, %c0_i32, %c0_i32_0, %c0_i32_1 : i32, i32, i32, i32
  }
  func.func @transform_1(%arg0: i32) -> (i32, i32) {
    %c0_i32 = arith.constant 0 : i32
    %c0_i32_0 = arith.constant 0 : i32
    %c0_i32_1 = arith.constant 0 : i32
    return %c0_i32, %c0_i32_0 : i32, i32
  }
  func.func @transform_2(%arg0: i32) -> (i32, i32) {
    %c0_i32 = arith.constant 0 : i32
    %c0_i32_0 = arith.constant 0 : i32
    return %arg0, %c0_i32 : i32, i32
  }
  func.func @transform_3(%arg0: i32) -> (i32, i32, i32) {
    %c0_i32 = arith.constant 0 : i32
    %c0_i32_0 = arith.constant 0 : i32
    %c0_i32_1 = arith.constant 0 : i32
    return %arg0, %c0_i32, %c0_i32_0 : i32, i32, i32
  }
}

</mosaic_0001>

<bundles_post_ra>
// kernel: depthwise_separable_conv.3
= control target key start
LH: loop header
LB: loop body
LE: loop exit
PB: predicated region body
PF: predicated region fallthrough
CT: control target
= control target key end

     0   :  { %s373_s12 = smov 0   ;;  %s468_s0 = inlined_call_operand.vmem [shape: f32[512,128], index: 0, kind: input, shape index: {}]   ;;  %s469_s1 = inlined_call_operand.vmem [shape: f32[1,128], index: 1, kind: input, shape index: {}]   ;;  %s470_s2 = inlined_call_operand.vmem [shape: f32[1,128], index: 2, kind: input, shape index: {}]   ;;  %s471_s3 = inlined_call_operand.vmem [shape: f32[512,128], index: 3, kind: output, shape index: {}]  }
   0x1 LB: > { %s324_s13 = sadd.s32 4294967295, %s351_s12   ;;  %p328_p0 = scmp.ge.s32.totalorder %s351_s12, 1  ;;  %s351_s12 = sphi %s373_s12, %s13_s12  }
   0x2   : > { %p138_p1 = scmp.lt.s32.totalorder %s351_s12, 5 }
   0x4   : > { %p139_p2 = pnand %p328_p0, %p138_p1 }
   0x5   : > { %s329_s14 = sshll.u32 (!%p139_p2), %s324_s13, 4 }
   0x6   : > { %142 = sbr.rel (%p139_p2) target bundleno = 32 (0x20), region = 32  ;;  %p163_p3 = scmp.lt.s32.totalorder (!%p139_p2), %s329_s14, 63 }
   0xb   : > { %s473_s14 = smov (!%p163_p3, %s329_s14), 63  ;;  %v384_v0 = vld [vmem:[%s469_s1] ss:$0 sm:$0xff] }
   0xc   : > { %s330_s15 = sshll.u32 %s473_s14, 3  ;;  %v394_v1 = vld [vmem:[%s470_s2] ss:$0 sm:$0xff] }
   0xd   : > { %s389_s20 = scalar_lea.vmem %s468_s0, %s330_s15  ;;  %s417_s25 = scalar_lea.vmem %s471_s3, %s330_s15 }
   0xe   : > { %v174_v2 = vld [vmem:[%s389_s20] sm:$0xff]  ;;  %v175_v3 = vld [vmem:[%s389_s20 + $0x8] sm:$0xff]  ;;  %v176_v4 = vld [vmem:[%s389_s20 + $0x10] sm:$0xff] }
   0xf   : > { %v197_v5 = vmul.f32 %v384_v0, %v174_v2  ;;  %v198_v6 = vmul.f32 %v384_v0, %v175_v3  ;;  %v199_v7 = vmul.f32 %v384_v0, %v176_v4  ;;  %v177_v8 = vld [vmem:[%s389_s20 + $0x18] sm:$0xff]  ;;  %v178_v9 = vld [vmem:[%s389_s20 + $0x20] sm:$0xff]  ;;  %v179_v10 = vld [vmem:[%s389_s20 + $0x28] sm:$0xff] }
  0x10   : > { %v200_v11 = vmul.f32 %v384_v0, %v177_v8  ;;  %v201_v12 = vmul.f32 %v384_v0, %v178_v9  ;;  %v202_v13 = vmul.f32 %v384_v0, %v179_v10  ;;  %v180_v14 = vld [vmem:[%s389_s20 + $0x30] sm:$0xff]  ;;  %v181_v15 = vld [vmem:[%s389_s20 + $0x38] sm:$0xff]  ;;  %v182_v24 = vld [vmem:[%s389_s20 + $0x40] sm:$0xff] }
  0x11   : > { %v220_v16 = vadd.f32 %v394_v1, %v197_v5  ;;  %v221_v17 = vadd.f32 %v394_v1, %v198_v6  ;;  %v222_v18 = vadd.f32 %v394_v1, %v199_v7  ;;  %v203_v19 = vmul.f32 %v384_v0, %v180_v14  ;;  %v183_v25 = vld [vmem:[%s389_s20 + $0x48] sm:$0xff]  ;;  %v184_v26 = vld [vmem:[%s389_s20 + $0x50] sm:$0xff]  ;;  %v185_v31 = vld [vmem:[%s389_s20 + $0x58] sm:$0xff] }
  0x12   : > { %v223_v20 = vadd.f32 %v394_v1, %v200_v11  ;;  %v224_v21 = vadd.f32 %v394_v1, %v201_v12  ;;  %v225_v22 = vadd.f32 %v394_v1, %v202_v13  ;;  %v204_v23 = vmul.f32 %v384_v0, %v181_v15  ;;  %v186_v32 = vld [vmem:[%s389_s20 + $0x60] sm:$0xff]  ;;  %v187_v33 = vld [vmem:[%s389_s20 + $0x68] sm:$0xff]  ;;  %v188_v38 = vld [vmem:[%s389_s20 + $0x70] sm:$0xff] }
  0x13   : > { %v236_v27 = vmax.f32 %v220_v16, 0.0  ;;  %v237_v28 = vmax.f32 %v221_v17, 0.0  ;;  %v238_v29 = vmax.f32 %v222_v18, 0.0  ;;  %v226_v30 = vadd.f32 %v394_v1, %v203_v19  ;;  %v189_v43 = vld [vmem:[%s389_s20 + $0x78] sm:$0xff] }
  0x14   : > { %v239_v34 = vmax.f32 %v223_v20, 0.0  ;;  %v240_v35 = vmax.f32 %v224_v21, 0.0  ;;  %v241_v36 = vmax.f32 %v225_v22, 0.0  ;;  %v227_v37 = vadd.f32 %v394_v1, %v204_v23 }
  0x15   : > { %252 = vst [vmem:[%s417_s25] sm:$0xff] %v236_v27  ;;  %253 = vst [vmem:[%s417_s25 + $0x8] sm:$0xff] %v237_v28  ;;  %v242_v39 = vmax.f32 %v226_v30, 0.0  ;;  %v205_v40 = vmul.f32 %v384_v0, %v182_v24  ;;  %v206_v41 = vmul.f32 %v384_v0, %v183_v25  ;;  %v207_v42 = vmul.f32 %v384_v0, %v184_v26 }
  0x16   : > { %254 = vst [vmem:[%s417_s25 + $0x10] sm:$0xff] %v238_v29  ;;  %255 = vst [vmem:[%s417_s25 + $0x18] sm:$0xff] %v239_v34  ;;  %v243_v44 = vmax.f32 %v227_v37, 0.0  ;;  %v208_v45 = vmul.f32 %v384_v0, %v185_v31  ;;  %v209_v46 = vmul.f32 %v384_v0, %v186_v32  ;;  %v210_v47 = vmul.f32 %v384_v0, %v187_v33 }
  0x17   : > { %256 = vst [vmem:[%s417_s25 + $0x20] sm:$0xff] %v240_v35  ;;  %257 = vst [vmem:[%s417_s25 + $0x28] sm:$0xff] %v241_v36  ;;  %v228_v48 = vadd.f32 %v394_v1, %v205_v40  ;;  %v229_v49 = vadd.f32 %v394_v1, %v206_v41  ;;  %v230_v50 = vadd.f32 %v394_v1, %v207_v42 }
  0x18   : > { %258 = vst [vmem:[%s417_s25 + $0x30] sm:$0xff] %v242_v39  ;;  %v211_v51 = vmul.f32 %v384_v0, %v188_v38  ;;  %259 = vst [vmem:[%s417_s25 + $0x38] sm:$0xff] %v243_v44  ;;  %v231_v52 = vadd.f32 %v394_v1, %v208_v45  ;;  %v232_v53 = vadd.f32 %v394_v1, %v209_v46 }
  0x19   : > { %v233_v54 = vadd.f32 %v394_v1, %v210_v47  ;;  %v212_v55 = vmul.f32 %v384_v0, %v189_v43  ;;  %v244_v56 = vmax.f32 %v228_v48, 0.0  ;;  %v245_v57 = vmax.f32 %v229_v49, 0.0 }
  0x1a   : > { %v246_v58 = vmax.f32 %v230_v50, 0.0  ;;  %v234_v59 = vadd.f32 %v394_v1, %v211_v51  ;;  %v247_v60 = vmax.f32 %v231_v52, 0.0  ;;  %v248_v61 = vmax.f32 %v232_v53, 0.0 }
  0x1b   : > { %v249_v62 = vmax.f32 %v233_v54, 0.0  ;;  %v235_v63 = vadd.f32 %v394_v1, %v212_v55  ;;  %260 = vst [vmem:[%s417_s25 + $0x40] sm:$0xff] %v244_v56  ;;  %261 = vst [vmem:[%s417_s25 + $0x48] sm:$0xff] %v245_v57 }
  0x1c   : > { %262 = vst [vmem:[%s417_s25 + $0x50] sm:$0xff] %v246_v58  ;;  %v250_v2 = vmax.f32 %v234_v59, 0.0  ;;  %263 = vst [vmem:[%s417_s25 + $0x58] sm:$0xff] %v247_v60 }
  0x1d   : > { %264 = vst [vmem:[%s417_s25 + $0x60] sm:$0xff] %v248_v61  ;;  %265 = vst [vmem:[%s417_s25 + $0x68] sm:$0xff] %v249_v62  ;;  %v251_v0 = vmax.f32 %v235_v63, 0.0 }
  0x1e   : > { %266 = vst [vmem:[%s417_s25 + $0x70] sm:$0xff] %v250_v2 }
  0x1f   : > { %267 = vst [vmem:[%s417_s25 + $0x78] sm:$0xff] %v251_v0 }
  0x20 PF: > { %s13_s12 = sadd.s32 1, %s351_s12  }
  0x21   : > { %p10_p4 = scmp.ge.s32.totalorder %s13_s12, 6  }
  0x23   :  { %12 = sbr.rel (!%p10_p4) target bundleno = 1 (0x1), region = 62 }

// kernel: depthwise_separable_conv.2
= control target key start
LH: loop header
LB: loop body
LE: loop exit
PB: predicated region body
PF: predicated region fallthrough
CT: control target
= control target key end

     0   :  { %s1908_s12 = smov 0   ;;  %s2915_s0 = inlined_call_operand.vmem [shape: f32[4,10,18,128], index: 0, kind: input, shape index: {}]   ;;  %s2916_s1 = inlined_call_operand.vmem [shape: f32[1152,128], index: 1, kind: input, shape index: {}]   ;;  %s2917_s2 = inlined_call_operand.vmem [shape: f32[512,128], index: 2, kind: output, shape index: {0}]   ;;  %s2918_s3 = inlined_call_operand.vmem [shape: f32[4,8,128], index: 3, kind: output, shape index: {1}]  }
   0x1 LB: > { %s1914_s13 = sadd.s32 4294967295, %s1886_s12   ;;  %p1424_p0 = scmp.ge.s32.totalorder %s1886_s12, 1  ;;  %s1886_s12 = sphi %s1908_s12, %s14_s12  }
   0x2   : > { %p140_p1 = scmp.lt.s32.totalorder %s1886_s12, 5 }
   0x4   : > { %p141_p2 = pnand %p1424_p0, %p140_p1 }
   0x6   : > { %144 = sbr.rel (%p141_p2) target bundleno = 421 (0x1a5), region = 28 }
   0xb   : > { %v416_v0 = vld [vmem:[%s2916_s1 + $0xf8] sm:$0xff]  ;;  %v415_v4 = vld [vmem:[%s2916_s1 + $0xf0] sm:$0xff]  ;;  %v414_v8 = vld [vmem:[%s2916_s1 + $0xe8] sm:$0xff]  ;;  %p168_p3 = scmp.lt.s32.totalorder %s1914_s13, 3  ;;  %vm237_vm0 = vcmask 1046528   ;;  %vm294_vm1 = vcmask 1045504  }
   0xc   : > { %v448_v1 = vld [vmem:[%s2916_s1 + $0x1f8] sm:$0xff]  ;;  %1431 = vmatprep.subr.mxu0 %v416_v0  ;;  %v447_v5 = vld [vmem:[%s2916_s1 + $0x1f0] sm:$0xff]  ;;  %v446_v9 = vld [vmem:[%s2916_s1 + $0x1e8] sm:$0xff]  ;;  %s1426_s22 = sshll.u32 %s1914_s13, 4  ;;  %vm1328_vm2 = vcmask 1040384   ;;  %vm1330_vm3 = vcmask 1041408  }
   0xd   : > { %v400_v2 = vld [vmem:[%s2916_s1 + $0x78] sm:$0xff]  ;;  %1511 = vmatprep.subr.mxu1 %v448_v1  ;;  %v399_v6 = vld [vmem:[%s2916_s1 + $0x70] sm:$0xff]  ;;  %v398_v10 = vld [vmem:[%s2916_s1 + $0x68] sm:$0xff]  ;;  %s2006_s20 = scalar_select %p168_p3, %s1914_s13, 3 }
   0xe   : > { %v432_v3 = vld [vmem:[%s2916_s1 + $0x178] sm:$0xff]  ;;  %1432 = vmatpush3.msra.mxu0 %v400_v2  ;;  %v431_v7 = vld [vmem:[%s2916_s1 + $0x170] sm:$0xff]  ;;  %v430_v11 = vld [vmem:[%s2916_s1 + $0x168] sm:$0xff]  ;;  %p2798_p4 = scmp.lt.s32.totalorder %s1426_s22, 63 }
   0xf   : > { %1512 = vmatpush3.msra.mxu1 %v432_v3  ;;  %1433 = vmatprep.subr.mxu0 %v415_v4  ;;  %v413_v12 = vld [vmem:[%s2916_s1 + $0xe0] sm:$0xff]  ;;  %v412_v16 = vld [vmem:[%s2916_s1 + $0xd8] sm:$0xff]  ;;  %v411_v20 = vld [vmem:[%s2916_s1 + $0xd0] sm:$0xff]  ;;  %s1871_s10 = smul.u32 240, %s2006_s20  ;;  %s1428_s27 = sshll.u32 %s2006_s20, 3 }
  0x10   : > { %1513 = vmatprep.subr.mxu1 %v447_v5  ;;  %1434 = vmatpush3.msra.mxu0 %v399_v6  ;;  %v445_v13 = vld [vmem:[%s2916_s1 + $0x1e0] sm:$0xff]  ;;  %v444_v17 = vld [vmem:[%s2916_s1 + $0x1d8] sm:$0xff]  ;;  %v443_v21 = vld [vmem:[%s2916_s1 + $0x1d0] sm:$0xff]  ;;  %s2955_s22 = smov (!%p2798_p4, %s1426_s22), 63  ;;  %s182_s30 = scalar_lea.vmem %s2918_s3, %s1428_s27 }
  0x11   : > { %1514 = vmatpush3.msra.mxu1 %v431_v7  ;;  %1435 = vmatprep.subr.mxu0 %v414_v8  ;;  %v397_v14 = vld [vmem:[%s2916_s1 + $0x60] sm:$0xff]  ;;  %v396_v18 = vld [vmem:[%s2916_s1 + $0x58] sm:$0xff]  ;;  %v395_v22 = vld [vmem:[%s2916_s1 + $0x50] sm:$0xff]  ;;  %s2060_s5 = scalar_lea.vmem %s2915_s0, %s1871_s10  ;;  %s1427_s13 = sshll.u32 %s2955_s22, 3 }
  0x12   : > { %1515 = vmatprep.subr.mxu1 %v446_v9  ;;  %v429_v15 = vld [vmem:[%s2916_s1 + $0x160] sm:$0xff]  ;;  %1436 = vmatpush3.msra.mxu0 %v398_v10  ;;  %v428_v19 = vld [vmem:[%s2916_s1 + $0x158] sm:$0xff]  ;;  %v427_v23 = vld [vmem:[%s2916_s1 + $0x150] sm:$0xff]  ;;  %s2840_s26 = scalar_lea.vmem %s2917_s2, %s1427_s13 }
  0x13   : > { %1516 = vmatpush3.msra.mxu1 %v430_v11  ;;  %1437 = vmatprep.subr.mxu0 %v413_v12  ;;  %v410_v24 = vld [vmem:[%s2916_s1 + $0xc8] sm:$0xff]  ;;  %v409_v28 = vld [vmem:[%s2916_s1 + $0xc0] sm:$0xff]  ;;  %v408_v32 = vld [vmem:[%s2916_s1 + $0xb8] sm:$0xff] }
  0x14   : > { %1517 = vmatprep.subr.mxu1 %v445_v13  ;;  %1438 = vmatpush3.msra.mxu0 %v397_v14  ;;  %v442_v25 = vld [vmem:[%s2916_s1 + $0x1c8] sm:$0xff]  ;;  %v441_v29 = vld [vmem:[%s2916_s1 + $0x1c0] sm:$0xff]  ;;  %v440_v33 = vld [vmem:[%s2916_s1 + $0x1b8] sm:$0xff] }
  0x15   : > { %1518 = vmatpush3.msra.mxu1 %v429_v15  ;;  %1439 = vmatprep.subr.mxu0 %v412_v16  ;;  %v394_v26 = vld [vmem:[%s2916_s1 + $0x48] sm:$0xff]  ;;  %v393_v30 = vld [vmem:[%s2916_s1 + $0x40] sm:$0xff]  ;;  %v392_v34 = vld [vmem:[%s2916_s1 + $0x38] sm:$0xff] }
  0x16   : > { %1519 = vmatprep.subr.mxu1 %v444_v17  ;;  %1440 = vmatpush3.msra.mxu0 %v396_v18  ;;  %v426_v27 = vld [vmem:[%s2916_s1 + $0x148] sm:$0xff]  ;;  %v425_v31 = vld [vmem:[%s2916_s1 + $0x140] sm:$0xff]  ;;  %v424_v35 = vld [vmem:[%s2916_s1 + $0x138] sm:$0xff] }
  0x17   : > { %1520 = vmatpush3.msra.mxu1 %v428_v19  ;;  %1441 = vmatprep.subr.mxu0 %v411_v20  ;;  %v407_v36 = vld [vmem:[%s2916_s1 + $0xb0] sm:$0xff]  ;;  %v406_v40 = vld [vmem:[%s2916_s1 + $0xa8] sm:$0xff]  ;;  %v405_v44 = vld [vmem:[%s2916_s1 + $0xa0] sm:$0xff] }
  0x18   : > { %1521 = vmatprep.subr.mxu1 %v443_v21  ;;  %1442 = vmatpush3.msra.mxu0 %v395_v22  ;;  %v439_v37 = vld [vmem:[%s2916_s1 + $0x1b0] sm:$0xff]  ;;  %v438_v41 = vld [vmem:[%s2916_s1 + $0x1a8] sm:$0xff]  ;;  %v437_v45 = vld [vmem:[%s2916_s1 + $0x1a0] sm:$0xff] }
  0x19   : > { %1522 = vmatpush3.msra.mxu1 %v427_v23  ;;  %1443 = vmatprep.subr.mxu0 %v410_v24  ;;  %v391_v38 = vld [vmem:[%s2916_s1 + $0x30] sm:$0xff]  ;;  %v390_v42 = vld [vmem:[%s2916_s1 + $0x28] sm:$0xff]  ;;  %v389_v46 = vld [vmem:[%s2916_s1 + $0x20] sm:$0xff] }
  0x1a   : > { %1523 = vmatprep.subr.mxu1 %v442_v25  ;;  %1444 = vmatpush3.msra.mxu0 %v394_v26  ;;  %v423_v39 = vld [vmem:[%s2916_s1 + $0x130] sm:$0xff]  ;;  %v422_v43 = vld [vmem:[%s2916_s1 + $0x128] sm:$0xff]  ;;  %v421_v47 = vld [vmem:[%s2916_s1 + $0x120] sm:$0xff] }
  0x1b   : > { %1524 = vmatpush3.msra.mxu1 %v426_v27  ;;  %1445 = vmatprep.subr.mxu0 %v409_v28  ;;  %v404_v48 = vld [vmem:[%s2916_s1 + $0x98] sm:$0xff]  ;;  %v183_v50 = vld [vmem:[%s2060_s5] sm:$0xff]  ;;  %v2082_v51 = vld [vmem:[%s2060_s5 + $0x8] sm:$0xff] }
  0x1c   : > { %1525 = vmatprep.subr.mxu1 %v441_v29  ;;  %1446 = vmatpush3.msra.mxu0 %v393_v30  ;;  %v436_v49 = vld [vmem:[%s2916_s1 + $0x198] sm:$0xff]  ;;  %v403_v54 = vld [vmem:[%s2916_s1 + $0x90] sm:$0xff]  ;;  %v238_v58 = vrot.slane %v183_v50, 1  ;;  %v239_v59 = vrot.slane %v2082_v51, 1  ;;  %v402_v61 = vld [vmem:[%s2916_s1 + $0x88] sm:$0xff]  ;;  %v295_v1 = vrot.slane %v183_v50, 2 }
  0x1d   : > { %1526 = vmatpush3.msra.mxu1 %v425_v31  ;;  %1447 = vmatprep.subr.mxu0 %v408_v32  ;;  %v388_v52 = vld [vmem:[%s2916_s1 + $0x18] sm:$0xff]  ;;  %v435_v55 = vld [vmem:[%s2916_s1 + $0x190] sm:$0xff]  ;;  %v434_v62 = vld [vmem:[%s2916_s1 + $0x188] sm:$0xff]  ;;  %v296_v2 = vrot.slane %v2082_v51, 2 }
  0x1e   : > { %1527 = vmatprep.subr.mxu1 %v440_v33  ;;  %1448 = vmatpush3.msra.mxu0 %v392_v34  ;;  %v420_v53 = vld [vmem:[%s2916_s1 + $0x118] sm:$0xff]  ;;  %v387_v56 = vld [vmem:[%s2916_s1 + $0x10] sm:$0xff]  ;;  %v386_v63 = vld [vmem:[%s2916_s1 + $0x8] sm:$0xff]  ;;  %v240_v7 = vsel %vm237_vm0, %v238_v58, %v239_v59 }
  0x1f   : > { %1528 = vmatpush3.msra.mxu1 %v424_v35  ;;  %1449 = vmatprep.subr.mxu0 %v407_v36  ;;  %v419_v57 = vld [vmem:[%s2916_s1 + $0x110] sm:$0xff]  ;;  %v418_v0 = vld [vmem:[%s2916_s1 + $0x108] sm:$0xff]  ;;  %v401_v3 = vld [vmem:[%s2916_s1 + $0x80] sm:$0xff]  ;;  %v297_v11 = vsel %vm294_vm1, %v295_v1, %v296_v2 }
  0x20   : > { %1529 = vmatprep.subr.mxu1 %v439_v37  ;;  %1450 = vmatpush3.msra.mxu0 %v391_v38  ;;  %v185_v60 = vld [vmem:[%s2060_s5 + $0x10] sm:$0x3]  ;;  %v433_v4 = vld [vmem:[%s2916_s1 + $0x180] sm:$0xff]  ;;  %v186_v10 = vld [vmem:[%s2060_s5 + $0x18] sm:$0xff] }
  0x21   : > { %1530 = vmatpush3.msra.mxu1 %v423_v39  ;;  %1451 = vmatprep.subr.mxu0 %v406_v40  ;;  %v241_v5 = vrot.slane %v185_v60, 1  ;;  %v385_v6 = vld [vmem:[%s2916_s1] sm:$0xff]  ;;  %v298_v12 = vrot.slane %v185_v60, 2  ;;  %v480_v13 = vld [vmem:[%s2916_s1 + $0x2f8] sm:$0xff]  ;;  %v243_v15 = vrot.slane %v186_v10, 1  ;;  %v479_v19 = vld [vmem:[%s2916_s1 + $0x2f0] sm:$0xff] }
  0x22   : > { %1531 = vmatprep.subr.mxu1 %v438_v41  ;;  %1452 = vmatpush3.msra.mxu0 %v390_v42  ;;  %v2128_v8 = vld [vmem:[%s2060_s5 + $0x20] sm:$0xff]  ;;  %v464_v17 = vld [vmem:[%s2916_s1 + $0x278] sm:$0xff]  ;;  %v188_v18 = vld [vmem:[%s2060_s5 + $0x28] sm:$0x3]  ;;  %v300_v22 = vrot.slane %v186_v10, 2 }
  0x23   : > { %1532 = vmatpush3.msra.mxu1 %v422_v43  ;;  %1453 = vmatprep.subr.mxu0 %v405_v44  ;;  %v417_v9 = vld [vmem:[%s2916_s1 + $0x100] sm:$0xff]  ;;  %v242_v14 = vsel %vm237_vm0, %v239_v59, %v241_v5  ;;  %v244_v16 = vrot.slane %v2128_v8, 1  ;;  %v512_v20 = vld [vmem:[%s2916_s1 + $0x3f8] sm:$0xff]  ;;  %v299_v21 = vsel %vm294_vm1, %v296_v2, %v298_v12  ;;  %v301_v23 = vrot.slane %v2128_v8, 2  ;;  %v463_v24 = vld [vmem:[%s2916_s1 + $0x270] sm:$0xff] }
  0x24   : > { %1533 = vmatprep.subr.mxu1 %v437_v45  ;;  %1454 = vmatpush3.msra.mxu0 %v389_v46  ;;  %v246_v26 = vrot.slane %v188_v18, 1  ;;  %v2160_v27 = vld [vmem:[%s2060_s5 + $0x30] sm:$0xff]  ;;  %v478_v28 = vld [vmem:[%s2916_s1 + $0x2e8] sm:$0xff]  ;;  %v2166_v29 = vld [vmem:[%s2060_s5 + $0x38] sm:$0xff]  ;;  %v303_v33 = vrot.slane %v188_v18, 2 }
  0x25   : > { %1534 = vmatpush3.msra.mxu1 %v421_v47  ;;  %1455 = vmatprep.subr.mxu0 %v404_v48  ;;  %v2157_v25 = vsel %vm237_vm0, %v243_v15, %v244_v16  ;;  %v462_v30 = vld [vmem:[%s2916_s1 + $0x268] sm:$0xff]  ;;  %v496_v31 = vld [vmem:[%s2916_s1 + $0x378] sm:$0xff]  ;;  %v2177_v32 = vsel %vm294_vm1, %v300_v22, %v301_v23  ;;  %v248_v35 = vrot.slane %v2160_v27, 1  ;;  %v249_v36 = vrot.slane %v2166_v29, 1  ;;  %v477_v37 = vld [vmem:[%s2916_s1 + $0x2e0] sm:$0xff] }
  0x26   : > { %1535 = vmatprep.subr.mxu1 %v436_v49  ;;  %1456 = vmatpush3.msra.mxu0 %v388_v52  ;;  %v2181_v34 = vsel %vm237_vm0, %v244_v16, %v246_v26  ;;  %v191_v38 = vld [vmem:[%s2060_s5 + $0x40] sm:$0x3]  ;;  %v511_v39 = vld [vmem:[%s2916_s1 + $0x3f0] sm:$0xff]  ;;  %v2202_v42 = vsel %vm294_vm1, %v301_v23, %v303_v33  ;;  %v305_v43 = vrot.slane %v2160_v27, 2  ;;  %v306_v44 = vrot.slane %v2166_v29, 2  ;;  %v2210_v46 = vld [vmem:[%s2060_s5 + $0x48] sm:$0xff] }
  0x27   : > { %1536 = vmatpush3.msra.mxu1 %v420_v53  ;;  %1457 = vmatprep.subr.mxu0 %v403_v54  ;;  %v461_v40 = vld [vmem:[%s2916_s1 + $0x260] sm:$0xff]  ;;  %v495_v41 = vld [vmem:[%s2916_s1 + $0x370] sm:$0xff]  ;;  %v2207_v45 = vsel %vm237_vm0, %v248_v35, %v249_v36  ;;  %v251_v47 = vrot.slane %v191_v38, 1  ;;  %v476_v48 = vld [vmem:[%s2916_s1 + $0x2d8] sm:$0xff]  ;;  %v308_v54 = vrot.slane %v191_v38, 2 }
  0x28   : > { %1537 = vmatprep.subr.mxu1 %v435_v55  ;;  %1458 = vmatpush3.msra.mxu0 %v387_v56  ;;  %v2216_v49 = vld [vmem:[%s2060_s5 + $0x50] sm:$0xff]  ;;  %v494_v52 = vld [vmem:[%s2916_s1 + $0x368] sm:$0xff]  ;;  %v2232_v53 = vsel %vm294_vm1, %v305_v43, %v306_v44  ;;  %v253_v56 = vrot.slane %v2210_v46, 1  ;;  %v194_v59 = vld [vmem:[%s2060_s5 + $0x58] sm:$0x3] }
  0x29   : > { %1538 = vmatpush3.msra.mxu1 %v419_v57  ;;  %1459 = vmatprep.subr.mxu0 %v402_v61  ;;  %v2235_v55 = vsel %vm237_vm0, %v249_v36, %v251_v47  ;;  %v254_v57 = vrot.slane %v2216_v49, 1  ;;  %v475_v58 = vld [vmem:[%s2916_s1 + $0x2d0] sm:$0xff]  ;;  %v509_v60 = vld [vmem:[%s2916_s1 + $0x3e0] sm:$0xff]  ;;  %v311_v1 = vrot.slane %v2216_v49, 2  ;;  %v2268_v5 = vld [vmem:[%s2060_s5 + $0x68] sm:$0xff] }
  0x2a   : > { %1539 = vmatprep.subr.mxu1 %v434_v62  ;;  %1460 = vmatpush3.msra.mxu0 %v386_v63  ;;  %v459_v61 = vld [vmem:[%s2916_s1 + $0x250] sm:$0xff]  ;;  %v493_v62 = vld [vmem:[%s2916_s1 + $0x360] sm:$0xff]  ;;  %v2257_v63 = vsel %vm294_vm1, %v306_v44, %v308_v54  ;;  %v316_v16 = vrot.slane %v2268_v5, 2  ;;  %v2311_v23 = vld [vmem:[%s2060_s5 + $0xd8] sm:$0xff] }
  0x2b   : > { %1540 = vmatpush3.msra.mxu1 %v418_v0  ;;  %1461 = vmatprep.subr.mxu0 %v401_v3  ;;  %v310_v0 = vrot.slane %v2210_v46, 2  ;;  %v2262_v2 = vsel %vm237_vm0, %v253_v56, %v254_v57  ;;  %v2265_v3 = vld [vmem:[%s2060_s5 + $0x60] sm:$0xff]  ;;  %v209_v22 = vld [vmem:[%s2060_s5 + $0xd0] sm:$0x3]  ;;  %v212_v38 = vld [vmem:[%s2060_s5 + $0xe8] sm:$0x3] }
  0x2c   : > { %1541 = vmatprep.subr.mxu1 %v433_v4  ;;  %1462 = vmatpush3.msra.mxu0 %v385_v6  ;;  %v256_v4 = vrot.slane %v194_v59, 1  ;;  %v474_v6 = vld [vmem:[%s2916_s1 + $0x2c8] sm:$0xff]  ;;  %v315_v15 = vrot.slane %v2265_v3, 2  ;;  %v357_v26 = vrot.slane %v209_v22, 1  ;;  %v364_v33 = vrot.slane %v209_v22, 2  ;;  %v491_v36 = vld [vmem:[%s2916_s1 + $0x350] sm:$0xff] }
  0x2d   : > { %593 = vmatprep.mubr.f32.mxu0 %v240_v7  ;;  %1542 = vmatpush3.msra.mxu1 %v417_v9  ;;  %v508_v7 = vld [vmem:[%s2916_s1 + $0x3d8] sm:$0xff]  ;;  %v313_v9 = vrot.slane %v194_v59, 2  ;;  %v2288_v12 = vsel %vm294_vm1, %v310_v0, %v311_v1  ;;  %v374_v44 = vrot.slane %v212_v38, 1  ;;  %v381_v47 = vrot.slane %v212_v38, 2  ;;  %v2422_v22 = vld [vmem:[%s2060_s5 + $0x90] sm:$0xff] }
  0x2e   : > { %738 = vmatprep.mubr.f32.mxu1 %v186_v10  ;;  %594 = vmatmul.mubr.f32.vlgmr.msra.gmra.mxu0 %v183_v50  ;;  %v510_v50 = vld [vmem:[%s2916_s1 + $0x3e8] sm:$0xff]  ;;  %v2300_v18 = vsel %vm237_vm0, %v254_v57, %v256_v4  ;;  %v472_v56 = vld [vmem:[%s2916_s1 + $0x2b8] sm:$0xff]  ;;  %v2362_v57 = vld [vmem:[%s2060_s5 + $0x80] sm:$0xff]  ;;  %v2386_v0 = vsel %vm294_vm1, %v315_v15, %v316_v16 }
  0x2f   : > { %739 = vmatmul.mubr.f32.vlgmr.msra.gmra.mxu1 %v297_v11  ;;  %1591 = vmatprep.subr.mxu0 %v480_v13  ;;  %v492_v11 = vld [vmem:[%s2916_s1 + $0x358] sm:$0xff]  ;;  %v473_v13 = vld [vmem:[%s2916_s1 + $0x2c0] sm:$0xff]  ;;  %v2324_v35 = vsel %vm294_vm1, %v311_v1, %v313_v9  ;;  %v200_v9 = vld [vmem:[%s2060_s5 + $0x88] sm:$0x3] }
  0x30   : > { %598 = vmatprep.mubr.f32.mxu0 %v242_v14  ;;  %1592 = vmatpush3.msra.mxu0 %v464_v17  ;;  %v259_v14 = vrot.slane %v2268_v5, 1  ;;  %v2297_v17 = vld [vmem:[%s2060_s5 + $0xc8] sm:$0xff]  ;;  %v323_v38 = vrot.slane %v200_v9, 2 }
  0x31   : > { %743 = vmatprep.mubr.f32.mxu1 %v2128_v8  ;;  %1593 = vmatprep.subr.mxu0 %v479_v19  ;;  %v457_v19 = vld [vmem:[%s2916_s1 + $0x240] sm:$0xff] }
  0x32   : > { %1671 = vmatprep.subr.mxu1 %v512_v20  ;;  %599 = vmatmul.mubr.f32.gmra.mxu0 %v2082_v51  ;;  %v460_v51 = vld [vmem:[%s2916_s1 + $0x258] sm:$0xff]  ;;  %v2306_v20 = vld [vmem:[%s2060_s5 + $0x70] sm:$0x3] }
  0x33   : > { %744 = vmatmul.mubr.f32.gmra.mxu1 %v299_v21  ;;  %1594 = vmatpush3.msra.mxu0 %v463_v24  ;;  %v355_v21 = vrot.slane %v2297_v17, 1  ;;  %v507_v24 = vld [vmem:[%s2916_s1 + $0x3d0] sm:$0xff]  ;;  %v318_v1 = vrot.slane %v2306_v20, 2 }
  0x34   : > { %603 = vmatprep.mubr.f32.mxu0 %v2157_v25  ;;  %748 = vmatprep.mubr.f32.mxu1 %v2160_v27 }
  0x35   : > { %1595 = vmatprep.subr.mxu0 %v478_v28  ;;  %1672 = vmatpush3.msra.mxu1 %v496_v31  ;;  %v362_v28 = vrot.slane %v2297_v17, 2  ;;  %v371_v31 = vrot.slane %v2311_v23, 1 }
  0x36   : > { %1596 = vmatpush3.msra.mxu0 %v462_v30  ;;  %1673 = vmatprep.subr.mxu1 %v511_v39  ;;  %v2318_v30 = vld [vmem:[%s2060_s5 + $0xe0] sm:$0xff]  ;;  %v378_v39 = vrot.slane %v2311_v23, 2 }
  0x37   : > { %604 = vmatmul.mubr.f32.gmra.mxu0 %v186_v10  ;;  %749 = vmatmul.mubr.f32.gmra.mxu1 %v2177_v32  ;;  %v258_v10 = vrot.slane %v2265_v3, 1  ;;  %v2343_v43 = vsel %vm294_vm1, %v362_v28, %v364_v33  ;;  %v454_v33 = vld [vmem:[%s2916_s1 + $0x228] sm:$0xff] }
  0x38   : > { %608 = vmatprep.mubr.f32.mxu0 %v2181_v34  ;;  %753 = vmatprep.mubr.f32.mxu1 %v2166_v29 }
  0x39   : > { %1597 = vmatprep.subr.mxu0 %v477_v37  ;;  %1674 = vmatpush3.msra.mxu1 %v495_v41  ;;  %v372_v37 = vrot.slane %v2318_v30, 1  ;;  %v2338_v41 = vsel %vm237_vm0, %v355_v21, %v357_v26  ;;  %v470_v26 = vld [vmem:[%s2916_s1 + $0x2a8] sm:$0xff] }
  0x3a   : > { %1598 = vmatpush3.msra.mxu0 %v461_v40  ;;  %1675 = vmatprep.subr.mxu1 %v510_v50  ;;  %v379_v40 = vrot.slane %v2318_v30, 2  ;;  %v2349_v50 = vld [vmem:[%s2060_s5 + $0x78] sm:$0xff] }
  0x3b   : > { %609 = vmatmul.mubr.f32.gmra.mxu0 %v2128_v8  ;;  %754 = vmatmul.mubr.f32.gmra.mxu1 %v2202_v42  ;;  %v458_v8 = vld [vmem:[%s2916_s1 + $0x248] sm:$0xff]  ;;  %v2368_v59 = vsel %vm237_vm0, %v372_v37, %v374_v44  ;;  %v320_v15 = vrot.slane %v2349_v50, 2 }
  0x3c   : > { %613 = vmatprep.mubr.f32.mxu0 %v2207_v45  ;;  %758 = vmatprep.mubr.f32.mxu1 %v2210_v46  ;;  %v2356_v54 = vsel %vm294_vm1, %v378_v39, %v379_v40 }
  0x3d   : > { %1599 = vmatprep.subr.mxu0 %v476_v48  ;;  %1676 = vmatpush3.msra.mxu1 %v494_v52  ;;  %v2346_v48 = vsel %vm237_vm0, %v258_v10, %v259_v14  ;;  %v2353_v52 = vsel %vm237_vm0, %v371_v31, %v372_v37  ;;  %v505_v10 = vld [vmem:[%s2916_s1 + $0x3c0] sm:$0xff]  ;;  %v2428_v31 = vld [vmem:[%s2060_s5 + $0x98] sm:$0xff] }
  0x3e   : > { %1600 = vmatpush3.msra.mxu0 %v460_v51  ;;  %1677 = vmatprep.subr.mxu1 %v509_v60  ;;  %v261_v51 = vrot.slane %v2306_v20, 1  ;;  %v2371_v60 = vsel %vm294_vm1, %v379_v40, %v381_v47  ;;  %v268_v40 = vrot.slane %v2422_v22, 1  ;;  %v269_v44 = vrot.slane %v2428_v31, 1  ;;  %v469_v47 = vld [vmem:[%s2916_s1 + $0x2a0] sm:$0xff] }
  0x3f   : > { %614 = vmatmul.mubr.f32.gmra.mxu0 %v2160_v27  ;;  %759 = vmatmul.mubr.f32.gmra.mxu1 %v2232_v53 }
  0x40   : > { %618 = vmatprep.mubr.f32.mxu0 %v2235_v55  ;;  %763 = vmatprep.mubr.f32.mxu1 %v2216_v49  ;;  %v2390_v4 = vsel %vm237_vm0, %v259_v14, %v261_v51  ;;  %v2414_v14 = vsel %vm294_vm1, %v316_v16, %v318_v1  ;;  %v504_v16 = vld [vmem:[%s2916_s1 + $0x3b8] sm:$0xff]  ;;  %v503_v51 = vld [vmem:[%s2916_s1 + $0x3b0] sm:$0xff]  ;;  %v325_v1 = vrot.slane %v2422_v22, 2 }
  0x41   : > { %1601 = vmatprep.subr.mxu0 %v475_v58  ;;  %1678 = vmatpush3.msra.mxu1 %v493_v62  ;;  %v506_v58 = vld [vmem:[%s2916_s1 + $0x3c8] sm:$0xff] }
  0x42   : > { %1602 = vmatpush3.msra.mxu0 %v459_v61  ;;  %1679 = vmatprep.subr.mxu1 %v508_v7  ;;  %v456_v61 = vld [vmem:[%s2916_s1 + $0x238] sm:$0xff]  ;;  %v490_v62 = vld [vmem:[%s2916_s1 + $0x348] sm:$0xff]  ;;  %v264_v7 = vrot.slane %v2362_v57, 1 }
  0x43   : > { %619 = vmatmul.mubr.f32.gmra.mxu0 %v2166_v29  ;;  %764 = vmatmul.mubr.f32.gmra.mxu1 %v2257_v63 }
  0x44   : > { %623 = vmatprep.mubr.f32.mxu0 %v2262_v2  ;;  %768 = vmatprep.mubr.f32.mxu1 %v2265_v3 }
  0x45   : > { %1603 = vmatprep.subr.mxu0 %v474_v6  ;;  %1680 = vmatpush3.msra.mxu1 %v492_v11  ;;  %v263_v6 = vrot.slane %v2349_v50, 1  ;;  %v455_v11 = vld [vmem:[%s2916_s1 + $0x230] sm:$0xff] }
  0x46   : > { %1604 = vmatpush3.msra.mxu0 %v458_v8  ;;  %1681 = vmatprep.subr.mxu1 %v507_v24  ;;  %v471_v8 = vld [vmem:[%s2916_s1 + $0x2b0] sm:$0xff]  ;;  %v266_v24 = vrot.slane %v200_v9, 1 }
  0x47   : > { %624 = vmatmul.mubr.f32.gmra.mxu0 %v2210_v46  ;;  %769 = vmatmul.mubr.f32.gmra.mxu1 %v2288_v12  ;;  %v2419_v20 = vsel %vm237_vm0, %v263_v6, %v264_v7  ;;  %v326_v6 = vrot.slane %v2428_v31, 2 }
  0x48   : > { %628 = vmatprep.mubr.f32.mxu0 %v2300_v18  ;;  %773 = vmatprep.mubr.f32.mxu1 %v2268_v5  ;;  %v2447_v39 = vsel %vm237_vm0, %v264_v7, %v266_v24  ;;  %v2474_v7 = vsel %vm237_vm0, %v268_v40, %v269_v44  ;;  %v501_v40 = vld [vmem:[%s2916_s1 + $0x3a0] sm:$0xff] }
  0x49   : > { %1605 = vmatprep.subr.mxu0 %v473_v13  ;;  %1682 = vmatpush3.msra.mxu1 %v491_v36  ;;  %v489_v13 = vld [vmem:[%s2916_s1 + $0x340] sm:$0xff]  ;;  %v488_v36 = vld [vmem:[%s2916_s1 + $0x338] sm:$0xff]  ;;  %v2499_v24 = vsel %vm294_vm1, %v325_v1, %v326_v6 }
  0x4a   : > { %1606 = vmatpush3.msra.mxu0 %v457_v19  ;;  %1683 = vmatprep.subr.mxu1 %v506_v58  ;;  %v321_v19 = vrot.slane %v2362_v57, 2  ;;  %v453_v58 = vld [vmem:[%s2916_s1 + $0x220] sm:$0xff] }
  0x4b   : > { %629 = vmatmul.mubr.f32.gmra.mxu0 %v2216_v49  ;;  %774 = vmatmul.mubr.f32.gmra.mxu1 %v2324_v35 }
  0x4c   : > { %633 = vmatprep.mubr.f32.mxu0 %v2346_v48  ;;  %778 = vmatprep.mubr.f32.mxu1 %v2349_v50  ;;  %v2444_v37 = vsel %vm294_vm1, %v320_v15, %v321_v19  ;;  %v452_v15 = vld [vmem:[%s2916_s1 + $0x218] sm:$0xff] }
  0x4d   : > { %1607 = vmatprep.subr.mxu0 %v472_v56  ;;  %1684 = vmatpush3.msra.mxu1 %v490_v62  ;;  %v203_v56 = vld [vmem:[%s2060_s5 + $0xa0] sm:$0x3]  ;;  %v2469_v62 = vsel %vm294_vm1, %v321_v19, %v323_v38  ;;  %v486_v19 = vld [vmem:[%s2916_s1 + $0x328] sm:$0xff]  ;;  %v467_v38 = vld [vmem:[%s2916_s1 + $0x290] sm:$0xff] }
  0x4e   : > { %1608 = vmatpush3.msra.mxu0 %v456_v61  ;;  %1685 = vmatprep.subr.mxu1 %v505_v10  ;;  %v487_v61 = vld [vmem:[%s2916_s1 + $0x330] sm:$0xff]  ;;  %v271_v9 = vrot.slane %v203_v56, 1  ;;  %v468_v10 = vld [vmem:[%s2916_s1 + $0x298] sm:$0xff] }
  0x4f   : > { %634 = vmatmul.mubr.f32.gmra.mxu0 %v2265_v3  ;;  %779 = vmatmul.mubr.f32.gmra.mxu1 %v2386_v0 }
  0x50   : > { %638 = vmatprep.mubr.f32.mxu0 %v2390_v4  ;;  %783 = vmatprep.mubr.f32.mxu1 %v2362_v57 }
  0x51   : > { %1609 = vmatprep.subr.mxu0 %v471_v8  ;;  %1686 = vmatpush3.msra.mxu1 %v489_v13  ;;  %v2477_v8 = vld [vmem:[%s2060_s5 + $0xa8] sm:$0xff] }
  0x52   : > { %1610 = vmatpush3.msra.mxu0 %v455_v11  ;;  %1687 = vmatprep.subr.mxu1 %v504_v16  ;;  %v2483_v11 = vld [vmem:[%s2060_s5 + $0xb0] sm:$0xff]  ;;  %v502_v13 = vld [vmem:[%s2916_s1 + $0x3a8] sm:$0xff]  ;;  %v2502_v16 = vsel %vm237_vm0, %v269_v44, %v271_v9  ;;  %v2532_v9 = vld [vmem:[%s2060_s5 + $0xc0] sm:$0xff] }
  0x53   : > { %639 = vmatmul.mubr.f32.gmra.mxu0 %v2268_v5  ;;  %784 = vmatmul.mubr.f32.gmra.mxu1 %v2414_v14  ;;  %v451_v44 = vld [vmem:[%s2916_s1 + $0x210] sm:$0xff] }
  0x54   : > { %643 = vmatprep.mubr.f32.mxu0 %v2419_v20  ;;  %788 = vmatprep.mubr.f32.mxu1 %v2422_v22 }
  0x55   : > { %1611 = vmatprep.subr.mxu0 %v470_v26  ;;  %1688 = vmatpush3.msra.mxu1 %v488_v36  ;;  %v328_v26 = vrot.slane %v203_v56, 2  ;;  %v274_v36 = vrot.slane %v2483_v11, 1 }
  0x56   : > { %1612 = vmatpush3.msra.mxu0 %v454_v33  ;;  %1689 = vmatprep.subr.mxu1 %v503_v51  ;;  %v273_v33 = vrot.slane %v2477_v8, 1  ;;  %v485_v51 = vld [vmem:[%s2916_s1 + $0x320] sm:$0xff] }
  0x57   : > { %644 = vmatmul.mubr.f32.gmra.mxu0 %v2349_v50  ;;  %789 = vmatmul.mubr.f32.gmra.mxu1 %v2444_v37  ;;  %v2524_v56 = vsel %vm294_vm1, %v326_v6, %v328_v26  ;;  %v500_v6 = vld [vmem:[%s2916_s1 + $0x398] sm:$0xff] }
  0x58   : > { %648 = vmatprep.mubr.f32.mxu0 %v2447_v39  ;;  %793 = vmatprep.mubr.f32.mxu1 %v2428_v31  ;;  %v2529_v1 = vsel %vm237_vm0, %v273_v33, %v274_v36 }
  0x59   : > { %1613 = vmatprep.subr.mxu0 %v469_v47  ;;  %1690 = vmatpush3.msra.mxu1 %v487_v61  ;;  %v206_v47 = vld [vmem:[%s2060_s5 + $0xb8] sm:$0x3]  ;;  %v331_v61 = vrot.slane %v2483_v11, 2 }
  0x5a   : > { %1614 = vmatpush3.msra.mxu0 %v453_v58  ;;  %1691 = vmatprep.subr.mxu1 %v502_v13  ;;  %v330_v58 = vrot.slane %v2477_v8, 2  ;;  %v466_v13 = vld [vmem:[%s2916_s1 + $0x288] sm:$0xff]  ;;  %v333_v33 = vrot.slane %v206_v47, 2 }
  0x5b   : > { %649 = vmatmul.mubr.f32.gmra.mxu0 %v2362_v57  ;;  %794 = vmatmul.mubr.f32.gmra.mxu1 %v2469_v62 }
  0x5c   : > { %653 = vmatprep.mubr.f32.mxu0 %v2474_v7  ;;  %798 = vmatprep.mubr.f32.mxu1 %v2477_v8  ;;  %v2551_v26 = vsel %vm294_vm1, %v330_v58, %v331_v61  ;;  %v449_v58 = vld [vmem:[%s2916_s1 + $0x200] sm:$0xff] }
  0x5d   : > { %1615 = vmatprep.subr.mxu0 %v468_v10  ;;  %1692 = vmatpush3.msra.mxu1 %v486_v19  ;;  %v276_v10 = vrot.slane %v206_v47, 1  ;;  %v484_v19 = vld [vmem:[%s2916_s1 + $0x318] sm:$0xff]  ;;  %v465_v47 = vld [vmem:[%s2916_s1 + $0x280] sm:$0xff] }
  0x5e   : > { %1616 = vmatpush3.msra.mxu0 %v452_v15  ;;  %1693 = vmatprep.subr.mxu1 %v501_v40  ;;  %v450_v15 = vld [vmem:[%s2916_s1 + $0x208] sm:$0xff] }
  0x5f   : > { %654 = vmatmul.mubr.f32.gmra.mxu0 %v2422_v22  ;;  %799 = vmatmul.mubr.f32.gmra.mxu1 %v2499_v24  ;;  %v2557_v40 = vsel %vm237_vm0, %v274_v36, %v276_v10  ;;  %v2572_v36 = vsel %vm294_vm1, %v331_v61, %v333_v33  ;;  %v482_v10 = vld [vmem:[%s2916_s1 + $0x308] sm:$0xff]  ;;  %v481_v61 = vld [vmem:[%s2916_s1 + $0x300] sm:$0xff] }
  0x60   : > { %658 = vmatprep.mubr.f32.mxu0 %v2502_v16  ;;  %803 = vmatprep.mubr.f32.mxu1 %v2483_v11 }
  0x61   : > { %1617 = vmatprep.subr.mxu0 %v467_v38  ;;  %1694 = vmatpush3.msra.mxu1 %v485_v51  ;;  %v499_v38 = vld [vmem:[%s2916_s1 + $0x390] sm:$0xff]  ;;  %v498_v51 = vld [vmem:[%s2916_s1 + $0x388] sm:$0xff] }
  0x62   : > { %1618 = vmatpush3.msra.mxu0 %v451_v44  ;;  %1695 = vmatprep.subr.mxu1 %v500_v6  ;;  %v483_v44 = vld [vmem:[%s2916_s1 + $0x310] sm:$0xff]  ;;  %v528_v6 = vld [vmem:[%s2916_s1 + $0x478] sm:$0xff] }
  0x63   : > { %659 = vmatmul.mubr.f32.gmra.mxu0 %v2428_v31  ;;  %804 = vmatmul.mubr.f32.gmra.mxu1 %v2524_v56 }
  0x64   : > { %663 = vmatprep.mubr.f32.mxu0 %v2529_v1  ;;  %808 = vmatprep.mubr.f32.mxu1 %v2532_v9 }
  0x65   : > { %1619 = vmatprep.subr.mxu0 %v466_v13  ;;  %1696 = vmatpush3.msra.mxu1 %v484_v19  ;;  %v497_v13 = vld [vmem:[%s2916_s1 + $0x380] sm:$0xff] }
  0x66   : > { %1620 = vmatpush3.msra.mxu0 %v450_v15  ;;  %1697 = vmatprep.subr.mxu1 %v499_v38  ;;  %v527_v15 = vld [vmem:[%s2916_s1 + $0x470] sm:$0xff] }
  0x67   : > { %664 = vmatmul.mubr.f32.gmra.mxu0 %v2477_v8  ;;  %809 = vmatmul.mubr.f32.gmra.mxu1 %v2551_v26 }
  0x68   : > { %668 = vmatprep.mubr.f32.mxu0 %v2557_v40  ;;  %813 = vmatprep.mubr.f32.mxu1 %v2297_v17 }
  0x69   : > { %1698 = vmatpush3.msra.mxu1 %v483_v44  ;;  %1621 = vmatprep.subr.mxu0 %v465_v47 }
  0x6a   : > { %1699 = vmatprep.subr.mxu1 %v498_v51  ;;  %1622 = vmatpush3.msra.mxu0 %v449_v58 }
  0x6b   : > { %669 = vmatmul.mubr.f32.gmra.mxu0 %v2483_v11  ;;  %814 = vmatmul.mubr.f32.gmra.mxu1 %v2572_v36 }
  0x6c   : > { %1700 = vmatpush3.msra.mxu1 %v482_v10  ;;  %883 = vmatprep.mubr.f32.mxu0 %v2177_v32  ;;  %v526_v32 = vld [vmem:[%s2916_s1 + $0x468] sm:$0xff] }
  0x6d   : > { %1701 = vmatprep.subr.mxu1 %v497_v13  ;;  %1028 = vmatprep.mubr.f32.mxu1 %v2207_v45 }
  0x6e   : > { %1702 = vmatpush3.msra.mxu1 %v481_v61  ;;  %1783 = vmatprep.subr.mxu0 %v528_v6 }
  0x6f   : > { %884 = vmatmul.mubr.f32.vlgmr.msra.gmra.mxu0 %v2157_v25  ;;  %1029 = vmatmul.mubr.f32.vlgmr.msra.gmra.mxu1 %v2160_v27  ;;  %v525_v25 = vld [vmem:[%s2916_s1 + $0x460] sm:$0xff]  ;;  %v524_v27 = vld [vmem:[%s2916_s1 + $0x458] sm:$0xff] }
  0x70   : > { %888 = vmatprep.mubr.f32.mxu0 %v2202_v42  ;;  %1784 = vmatpush3.msra.mxu0 %v528_v6  ;;  %v521_v42 = vld [vmem:[%s2916_s1 + $0x440] sm:$0xff] }
  0x71   : > { %1033 = vmatprep.mubr.f32.mxu1 %v2235_v55  ;;  %1785 = vmatprep.subr.mxu0 %v527_v15 }
  0x72   : > { %1839 = vmatprep.subr.mxu1 %v528_v6  ;;  %1786 = vmatpush3.msra.mxu0 %v527_v15 }
  0x73   : > { %889 = vmatmul.mubr.f32.gmra.mxu0 %v2181_v34  ;;  %1034 = vmatmul.mubr.f32.gmra.mxu1 %v2166_v29  ;;  %v523_v29 = vld [vmem:[%s2916_s1 + $0x450] sm:$0xff]  ;;  %v522_v34 = vld [vmem:[%s2916_s1 + $0x448] sm:$0xff] }
  0x74   : > { %893 = vmatprep.mubr.f32.mxu0 %v2232_v53  ;;  %1038 = vmatprep.mubr.f32.mxu1 %v2262_v2 }
  0x75   : > { %1787 = vmatprep.subr.mxu0 %v526_v32  ;;  %1855 = vmatpush3.msra.mxu1 %v528_v6 }
  0x76   : > { %1788 = vmatpush3.msra.mxu0 %v526_v32  ;;  %1840 = vmatprep.subr.mxu1 %v527_v15 }
  0x77   : > { %894 = vmatmul.mubr.f32.gmra.mxu0 %v2207_v45  ;;  %1039 = vmatmul.mubr.f32.gmra.mxu1 %v2210_v46  ;;  %v520_v45 = vld [vmem:[%s2916_s1 + $0x438] sm:$0xff]  ;;  %v519_v46 = vld [vmem:[%s2916_s1 + $0x430] sm:$0xff] }
  0x78   : > { %898 = vmatprep.mubr.f32.mxu0 %v2257_v63  ;;  %1043 = vmatprep.mubr.f32.mxu1 %v2300_v18 }
  0x79   : > { %1789 = vmatprep.subr.mxu0 %v525_v25  ;;  %1856 = vmatpush3.msra.mxu1 %v527_v15 }
  0x7a   : > { %1790 = vmatpush3.msra.mxu0 %v525_v25  ;;  %1841 = vmatprep.subr.mxu1 %v526_v32 }
  0x7b   : > { %899 = vmatmul.mubr.f32.gmra.mxu0 %v2235_v55  ;;  %1044 = vmatmul.mubr.f32.gmra.mxu1 %v2216_v49  ;;  %v518_v49 = vld [vmem:[%s2916_s1 + $0x428] sm:$0xff]  ;;  %v354_v55 = vrot.slane %v2532_v9, 1 }
  0x7c   : > { %903 = vmatprep.mubr.f32.mxu0 %v2288_v12  ;;  %1048 = vmatprep.mubr.f32.mxu1 %v2346_v48 }
  0x7d   : > { %1791 = vmatprep.subr.mxu0 %v524_v27  ;;  %1857 = vmatpush3.msra.mxu1 %v526_v32 }
  0x7e   : > { %1792 = vmatpush3.msra.mxu0 %v524_v27  ;;  %1842 = vmatprep.subr.mxu1 %v525_v25 }
  0x7f   : > { %904 = vmatmul.mubr.f32.gmra.mxu0 %v2262_v2  ;;  %1049 = vmatmul.mubr.f32.gmra.mxu1 %v2265_v3  ;;  %v517_v2 = vld [vmem:[%s2916_s1 + $0x420] sm:$0xff]  ;;  %v356_v3 = vsel %vm237_vm0, %v354_v55, %v355_v21  ;;  %v515_v21 = vld [vmem:[%s2916_s1 + $0x410] sm:$0xff] }
  0x80   : > { %908 = vmatprep.mubr.f32.mxu0 %v2324_v35  ;;  %1053 = vmatprep.mubr.f32.mxu1 %v2390_v4 }
  0x81   : > { %1793 = vmatprep.subr.mxu0 %v523_v29  ;;  %1858 = vmatpush3.msra.mxu1 %v525_v25 }
  0x82   : > { %1794 = vmatpush3.msra.mxu0 %v523_v29  ;;  %1843 = vmatprep.subr.mxu1 %v524_v27 }
  0x83   : > { %909 = vmatmul.mubr.f32.gmra.mxu0 %v2300_v18  ;;  %1054 = vmatmul.mubr.f32.gmra.mxu1 %v2268_v5  ;;  %v516_v5 = vld [vmem:[%s2916_s1 + $0x418] sm:$0xff]  ;;  %v361_v18 = vrot.slane %v2532_v9, 2 }
  0x84   : > { %913 = vmatprep.mubr.f32.mxu0 %v2386_v0  ;;  %1058 = vmatprep.mubr.f32.mxu1 %v2419_v20 }
  0x85   : > { %1795 = vmatprep.subr.mxu0 %v522_v34  ;;  %1859 = vmatpush3.msra.mxu1 %v524_v27 }
  0x86   : > { %1796 = vmatpush3.msra.mxu0 %v522_v34  ;;  %1844 = vmatprep.subr.mxu1 %v523_v29 }
  0x87   : > { %914 = vmatmul.mubr.f32.gmra.mxu0 %v2346_v48  ;;  %1059 = vmatmul.mubr.f32.gmra.mxu1 %v2349_v50  ;;  %v363_v48 = vsel %vm294_vm1, %v361_v18, %v362_v28  ;;  %v514_v50 = vld [vmem:[%s2916_s1 + $0x408] sm:$0xff]  ;;  %v513_v28 = vld [vmem:[%s2916_s1 + $0x400] sm:$0xff] }
  0x88   : > { %918 = vmatprep.mubr.f32.mxu0 %v2414_v14  ;;  %1063 = vmatprep.mubr.f32.mxu1 %v2447_v39 }
  0x89   : > { %1797 = vmatprep.subr.mxu0 %v521_v42  ;;  %1860 = vmatpush3.msra.mxu1 %v523_v29 }
  0x8a   : > { %1798 = vmatpush3.msra.mxu0 %v521_v42  ;;  %1845 = vmatprep.subr.mxu1 %v522_v34 }
  0x8b   : > { %919 = vmatmul.mubr.f32.gmra.mxu0 %v2390_v4  ;;  %1064 = vmatmul.mubr.f32.gmra.mxu1 %v2362_v57 }
  0x8c   : > { %923 = vmatprep.mubr.f32.mxu0 %v2444_v37  ;;  %1068 = vmatprep.mubr.f32.mxu1 %v2474_v7 }
  0x8d   : > { %1799 = vmatprep.subr.mxu0 %v520_v45  ;;  %1861 = vmatpush3.msra.mxu1 %v522_v34 }
  0x8e   : > { %1800 = vmatpush3.msra.mxu0 %v520_v45  ;;  %1846 = vmatprep.subr.mxu1 %v521_v42 }
  0x8f   : > { %924 = vmatmul.mubr.f32.gmra.mxu0 %v2419_v20  ;;  %1069 = vmatmul.mubr.f32.gmra.mxu1 %v2422_v22 }
  0x90   : > { %928 = vmatprep.mubr.f32.mxu0 %v2469_v62  ;;  %1073 = vmatprep.mubr.f32.mxu1 %v2502_v16 }
  0x91   : > { %1801 = vmatprep.subr.mxu0 %v519_v46  ;;  %1862 = vmatpush3.msra.mxu1 %v521_v42 }
  0x92   : > { %1802 = vmatpush3.msra.mxu0 %v519_v46  ;;  %1847 = vmatprep.subr.mxu1 %v520_v45 }
  0x93   : > { %929 = vmatmul.mubr.f32.gmra.mxu0 %v2447_v39  ;;  %1074 = vmatmul.mubr.f32.gmra.mxu1 %v2428_v31 }
  0x94   : > { %933 = vmatprep.mubr.f32.mxu0 %v2499_v24  ;;  %1078 = vmatprep.mubr.f32.mxu1 %v2529_v1 }
  0x95   : > { %1803 = vmatprep.subr.mxu0 %v518_v49  ;;  %1863 = vmatpush3.msra.mxu1 %v520_v45 }
  0x96   : > { %1804 = vmatpush3.msra.mxu0 %v518_v49  ;;  %1848 = vmatprep.subr.mxu1 %v519_v46 }
  0x97   : > { %934 = vmatmul.mubr.f32.gmra.mxu0 %v2474_v7  ;;  %1079 = vmatmul.mubr.f32.gmra.mxu1 %v2477_v8 }
  0x98   : > { %938 = vmatprep.mubr.f32.mxu0 %v2524_v56  ;;  %1083 = vmatprep.mubr.f32.mxu1 %v2557_v40 }
  0x99   : > { %1805 = vmatprep.subr.mxu0 %v517_v2  ;;  %1864 = vmatpush3.msra.mxu1 %v519_v46 }
  0x9a   : > { %1806 = vmatpush3.msra.mxu0 %v517_v2  ;;  %1849 = vmatprep.subr.mxu1 %v518_v49 }
  0x9b   : > { %939 = vmatmul.mubr.f32.gmra.mxu0 %v2502_v16  ;;  %1084 = vmatmul.mubr.f32.gmra.mxu1 %v2483_v11 }
  0x9c   : > { %943 = vmatprep.mubr.f32.mxu0 %v2551_v26  ;;  %1088 = vmatprep.mubr.f32.mxu1 %v356_v3 }
  0x9d   : > { %1807 = vmatprep.subr.mxu0 %v516_v5  ;;  %1865 = vmatpush3.msra.mxu1 %v518_v49 }
  0x9e   : > { %1808 = vmatpush3.msra.mxu0 %v516_v5  ;;  %1850 = vmatprep.subr.mxu1 %v517_v2 }
  0x9f   : > { %944 = vmatmul.mubr.f32.gmra.mxu0 %v2529_v1  ;;  %1089 = vmatmul.mubr.f32.gmra.mxu1 %v2532_v9 }
  0xa0   : > { %948 = vmatprep.mubr.f32.mxu0 %v2572_v36  ;;  %1093 = vmatprep.mubr.f32.mxu1 %v2338_v41 }
  0xa1   : > { %1809 = vmatprep.subr.mxu0 %v515_v21  ;;  %1866 = vmatpush3.msra.mxu1 %v517_v2 }
  0xa2   : > { %1810 = vmatpush3.msra.mxu0 %v515_v21  ;;  %1851 = vmatprep.subr.mxu1 %v516_v5 }
  0xa3   : > { %949 = vmatmul.mubr.f32.gmra.mxu0 %v2557_v40  ;;  %1094 = vmatmul.mubr.f32.gmra.mxu1 %v2297_v17 }
  0xa4   : > { %953 = vmatprep.mubr.f32.mxu0 %v363_v48  ;;  %1098 = vmatprep.mubr.f32.mxu1 %v2353_v52 }
  0xa5   : > { %1811 = vmatprep.subr.mxu0 %v514_v50  ;;  %1867 = vmatpush3.msra.mxu1 %v516_v5 }
  0xa6   : > { %1812 = vmatpush3.msra.mxu0 %v514_v50  ;;  %1852 = vmatprep.subr.mxu1 %v515_v21 }
  0xa7   : > { %954 = vmatmul.mubr.f32.gmra.mxu0 %v356_v3  ;;  %1099 = vmatmul.mubr.f32.gmra.mxu1 %v2311_v23 }
  0xa8   : > { %958 = vmatprep.mubr.f32.mxu0 %v2343_v43  ;;  %1103 = vmatprep.mubr.f32.mxu1 %v2368_v59 }
  0xa9   : > { %1868 = vmatpush3.msra.mxu1 %v515_v21  ;;  %1813 = vmatprep.subr.mxu0 %v513_v28 }
  0xaa   : > { %1853 = vmatprep.subr.mxu1 %v514_v50  ;;  %1814 = vmatpush3.msra.mxu0 %v513_v28 }
  0xab   : > { %959 = vmatmul.mubr.f32.gmra.mxu0 %v2338_v41  ;;  %1104 = vmatmul.mubr.f32.gmra.mxu1 %v2318_v30 }
  0xac   : > { %1869 = vmatpush3.msra.mxu1 %v514_v50  ;;  %1815 = vmatprep.mubr.f32.mxu0 %v2232_v53 }
  0xad   : > { %1854 = vmatprep.subr.mxu1 %v513_v28  ;;  %1827 = vmatprep.mubr.f32.mxu1 %v2499_v24 }
  0xae   : > { %1870 = vmatpush3.msra.mxu1 %v513_v28 }
  0xaf   : > { %1816 = vmatmul.mubr.f32.vlgmr.msra.gmra.mxu0 %v2257_v63  ;;  %1828 = vmatmul.mubr.f32.vlgmr.msra.gmra.mxu1 %v2524_v56 }
  0xb0   : > { %1818 = vmatprep.mubr.f32.mxu0 %v2288_v12  ;;  %1830 = vmatprep.mubr.f32.mxu1 %v2551_v26 }
  0xb3   : > { %1819 = vmatmul.mubr.f32.gmra.mxu0 %v2324_v35  ;;  %1831 = vmatmul.mubr.f32.gmra.mxu1 %v2572_v36 }
  0xb4   : > { %1821 = vmatprep.mubr.f32.mxu0 %v2386_v0  ;;  %1833 = vmatprep.mubr.f32.mxu1 %v363_v48 }
  0xb7   : > { %1822 = vmatmul.mubr.f32.gmra.mxu0 %v2414_v14  ;;  %1834 = vmatmul.mubr.f32.gmra.mxu1 %v2343_v43 }
  0xb8   : > { %1824 = vmatprep.mubr.f32.mxu0 %v2444_v37  ;;  %1836 = vmatprep.mubr.f32.mxu1 %v2356_v54 }
  0xbb   : > { %1825 = vmatmul.mubr.f32.gmra.mxu0 %v2469_v62  ;;  %1837 = vmatmul.mubr.f32.gmra.mxu1 %v2371_v60 }
  0xee   : > { %v1463_v53 = vpop.f32.mrf.mxu0 }
  0xef   : > { %v1543_v63 = vpop.f32.mrf.mxu1 }
  0xf0   : > { %v1464_v12 = vpop.f32.mrf.mxu0 }
  0xf1   : > { %v1544_v17 = vpop.f32.mrf.mxu1  ;;  %v1465_v23 = vadd.f32 %v1464_v12, %v1463_v53 }
  0xf2   : > { %v1545_v30 = vadd.f32 %v1544_v17, %v1543_v63  ;;  %v1466_v35 = vpop.f32.mrf.mxu0 }
  0xf3   : > { %v1546_v41 = vpop.f32.mrf.mxu1 }
  0xf4   : > { %v2721_v52 = vadd.f32 %v1545_v30, %v1465_v23  ;;  %v1467_v57 = vpop.f32.mrf.mxu0 }
  0xf5   : > { %v1547_v43 = vpop.f32.mrf.mxu1  ;;  %v1468_v59 = vadd.f32 %v1467_v57, %v1466_v35 }
  0xf6   : > { %v1548_v0 = vadd.f32 %v1547_v43, %v1546_v41 }
  0xf7   : > { %v1469_v4 = vpop.f32.mrf.mxu0  ;;  %v1549_v54 = vpop.f32.mrf.mxu1 }
  0xf8   : > { %v2723_v14 = vadd.f32 %v1548_v0, %v1468_v59 }
  0xf9   : > { %v1470_v20 = vpop.f32.mrf.mxu0  ;;  %v1550_v60 = vpop.f32.mrf.mxu1 }
  0xfa   : > { %v1471_v22 = vadd.f32 %v1470_v20, %v1469_v4  ;;  %v1551_v31 = vadd.f32 %v1550_v60, %v1549_v54 }
  0xfb   : > { %v1472_v37 = vpop.f32.mrf.mxu0  ;;  %v1552_v39 = vpop.f32.mrf.mxu1 }
  0xfc   : > { %v2725_v62 = vadd.f32 %v1551_v31, %v1471_v22 }
  0xfd   : > { %v1473_v7 = vpop.f32.mrf.mxu0  ;;  %v1553_v8 = vpop.f32.mrf.mxu1 }
  0xfe   : > { %v1474_v11 = vadd.f32 %v1473_v7, %v1472_v37  ;;  %v1554_v24 = vadd.f32 %v1553_v8, %v1552_v39 }
  0xff   : > { %v1475_v16 = vpop.f32.mrf.mxu0  ;;  %v1555_v56 = vpop.f32.mrf.mxu1 }
 0x100   : > { %v2727_v1 = vadd.f32 %v1554_v24, %v1474_v11 }
 0x101   : > { %v1476_v9 = vpop.f32.mrf.mxu0  ;;  %v1556_v19 = vpop.f32.mrf.mxu1 }
 0x102   : > { %v1477_v26 = vadd.f32 %v1476_v9, %v1475_v16  ;;  %v1557_v33 = vadd.f32 %v1556_v19, %v1555_v56 }
 0x103   : > { %v1478_v38 = vpop.f32.mrf.mxu0  ;;  %v1558_v40 = vpop.f32.mrf.mxu1 }
 0x104   : > { %v2729_v44 = vadd.f32 %v1557_v33, %v1477_v26 }
 0x105   : > { %v1479_v47 = vpop.f32.mrf.mxu0  ;;  %v1559_v51 = vpop.f32.mrf.mxu1 }
 0x106   : > { %v1480_v36 = vadd.f32 %v1479_v47, %v1478_v38  ;;  %v1560_v58 = vadd.f32 %v1559_v51, %v1558_v40 }
 0x107   : > { %v1481_v10 = vpop.f32.mrf.mxu0  ;;  %v1561_v13 = vpop.f32.mrf.mxu1 }
 0x108   : > { %v2731_v61 = vadd.f32 %v1560_v58, %v1480_v36 }
 0x109   : > { %v1482_v6 = vpop.f32.mrf.mxu0  ;;  %v1562_v15 = vpop.f32.mrf.mxu1 }
 0x10a   : > { %2919 = vst [vmem:[#allocation2_spill] sm:$0xff] %v2731_v61  ;;  %v1483_v32 = vadd.f32 %v1482_v6, %v1481_v10  ;;  %v1563_v25 = vadd.f32 %v1562_v15, %v1561_v13 }
 0x10b   : > { %v1484_v27 = vpop.f32.mrf.mxu0  ;;  %v1564_v29 = vpop.f32.mrf.mxu1 }
 0x10c   : > { %v2733_v34 = vadd.f32 %v1563_v25, %v1483_v32 }
 0x10d   : > { %v1485_v42 = vpop.f32.mrf.mxu0  ;;  %v1565_v45 = vpop.f32.mrf.mxu1 }
 0x10e   : > { %2920 = vst [vmem:[#allocation3_spill] sm:$0xff] %v2733_v34  ;;  %v1486_v46 = vadd.f32 %v1485_v42, %v1484_v27  ;;  %v1566_v49 = vadd.f32 %v1565_v45, %v1564_v29 }
 0x10f   : > { %v1487_v55 = vpop.f32.mrf.mxu0  ;;  %v1567_v2 = vpop.f32.mrf.mxu1 }
 0x110   : > { %v2735_v3 = vadd.f32 %v1566_v49, %v1486_v46 }
 0x111   : > { %v1488_v5 = vpop.f32.mrf.mxu0  ;;  %v1568_v18 = vpop.f32.mrf.mxu1 }
 0x112   : > { %2921 = vst [vmem:[#allocation4_spill] sm:$0xff] %v2735_v3  ;;  %v1489_v21 = vadd.f32 %v1488_v5, %v1487_v55  ;;  %v1569_v48 = vadd.f32 %v1568_v18, %v1567_v2 }
 0x113   : > { %v1490_v50 = vpop.f32.mrf.mxu0  ;;  %v1570_v28 = vpop.f32.mrf.mxu1 }
 0x114   : > { %v2737_v53 = vadd.f32 %v1569_v48, %v1489_v21 }
 0x115   : > { %v1491_v63 = vpop.f32.mrf.mxu0  ;;  %v1571_v12 = vpop.f32.mrf.mxu1 }
 0x116   : > { %v1492_v17 = vadd.f32 %v1491_v63, %v1490_v50  ;;  %v1572_v23 = vadd.f32 %v1571_v12, %v1570_v28 }
 0x117   : > { %v1493_v30 = vpop.f32.mrf.mxu0  ;;  %v1573_v35 = vpop.f32.mrf.mxu1 }
 0x118   : > { %v2739_v41 = vadd.f32 %v1572_v23, %v1492_v17 }
 0x119   : > { %v1494_v57 = vpop.f32.mrf.mxu0  ;;  %v1574_v43 = vpop.f32.mrf.mxu1 }
 0x11a   : > { %v1495_v59 = vadd.f32 %v1494_v57, %v1493_v30  ;;  %v1575_v0 = vadd.f32 %v1574_v43, %v1573_v35 }
 0x11b   : > { %v1496_v4 = vpop.f32.mrf.mxu0  ;;  %v1576_v54 = vpop.f32.mrf.mxu1 }
 0x11c   : > { %v2741_v20 = vadd.f32 %v1575_v0, %v1495_v59 }
 0x11d   : > { %v1497_v60 = vpop.f32.mrf.mxu0  ;;  %v1577_v22 = vpop.f32.mrf.mxu1 }
 0x11e   : > { %v1498_v31 = vadd.f32 %v1497_v60, %v1496_v4  ;;  %v1578_v37 = vadd.f32 %v1577_v22, %v1576_v54 }
 0x11f   : > { %v1499_v39 = vpop.f32.mrf.mxu0  ;;  %v1579_v7 = vpop.f32.mrf.mxu1 }
 0x120   : > { %v2743_v8 = vadd.f32 %v1578_v37, %v1498_v31 }
 0x121   : > { %v1500_v11 = vpop.f32.mrf.mxu0  ;;  %v1580_v24 = vpop.f32.mrf.mxu1 }
 0x122   : > { %v1501_v16 = vadd.f32 %v1500_v11, %v1499_v39  ;;  %v1581_v56 = vadd.f32 %v1580_v24, %v1579_v7 }
 0x123   : > { %v1502_v9 = vpop.f32.mrf.mxu0  ;;  %v1582_v19 = vpop.f32.mrf.mxu1 }
 0x124   : > { %v2745_v26 = vadd.f32 %v1581_v56, %v1501_v16 }
 0x125   : > { %v1503_v33 = vpop.f32.mrf.mxu0  ;;  %v1583_v38 = vpop.f32.mrf.mxu1 }
 0x126   : > { %2922 = vst [vmem:[#allocation5_spill] sm:$0xff] %v2745_v26  ;;  %v1504_v40 = vadd.f32 %v1503_v33, %v1502_v9  ;;  %v1584_v47 = vadd.f32 %v1583_v38, %v1582_v19 }
 0x127   : > { %v1505_v51 = vpop.f32.mrf.mxu0  ;;  %v1585_v36 = vpop.f32.mrf.mxu1 }
 0x128   : > { %v2747_v58 = vadd.f32 %v1584_v47, %v1504_v40 }
 0x129   : > { %v1506_v10 = vpop.f32.mrf.mxu0  ;;  %v1586_v13 = vpop.f32.mrf.mxu1 }
 0x12a   : > { %2923 = vst [vmem:[#allocation6_spill] sm:$0xff] %v2747_v58  ;;  %v1507_v6 = vadd.f32 %v1506_v10, %v1505_v51  ;;  %v1587_v15 = vadd.f32 %v1586_v13, %v1585_v36 }
 0x12b   : > { %v1508_v32 = vpop.f32.mrf.mxu0  ;;  %v1588_v25 = vpop.f32.mrf.mxu1 }
 0x12c   : > { %v2749_v27 = vadd.f32 %v1587_v15, %v1507_v6 }
 0x12d   : > { %v1509_v29 = vpop.f32.mrf.mxu0  ;;  %v1589_v42 = vpop.f32.mrf.mxu1 }
 0x12e   : > { %2924 = vst [vmem:[#allocation7_spill] sm:$0xff] %v2749_v27  ;;  %v1510_v45 = vadd.f32 %v1509_v29, %v1508_v32  ;;  %v1590_v46 = vadd.f32 %v1589_v42, %v1588_v25 }
 0x12f   : > { %v1623_v49 = vpop.f32.mrf.mxu0  ;;  %v2751_v55 = vpop.f32.mrf.mxu1 }
 0x130   : > { %v2753_v2 = vadd.f32 %v1590_v46, %v1510_v45 }
 0x131   : > { %v1624_v5 = vpop.f32.mrf.mxu0  ;;  %v1704_v18 = vpop.f32.mrf.mxu1 }
 0x132   : > { %2925 = vst [vmem:[#allocation8_spill] sm:$0xff] %v2753_v2 }
 0x133   : > { %v1626_v21 = vpop.f32.mrf.mxu0  ;;  %v2755_v48 = vpop.f32.mrf.mxu1 }
 0x135   : > { %v1627_v50 = vpop.f32.mrf.mxu0  ;;  %v1707_v28 = vpop.f32.mrf.mxu1 }
 0x137   : > { %v1629_v63 = vpop.f32.mrf.mxu0  ;;  %v2757_v12 = vpop.f32.mrf.mxu1 }
 0x139   : > { %v1630_v17 = vpop.f32.mrf.mxu0  ;;  %v1710_v23 = vpop.f32.mrf.mxu1 }
 0x13b   : > { %v1632_v30 = vpop.f32.mrf.mxu0  ;;  %v1712_v35 = vpop.f32.mrf.mxu1 }
 0x13d   : > { %v1633_v57 = vpop.f32.mrf.mxu0  ;;  %v1713_v43 = vpop.f32.mrf.mxu1 }
 0x13f   : > { %v1635_v59 = vpop.f32.mrf.mxu0  ;;  %v2759_v0 = vpop.f32.mrf.mxu1 }
 0x141   : > { %v1636_v4 = vpop.f32.mrf.mxu0  ;;  %v2761_v54 = vpop.f32.mrf.mxu1 }
 0x143   : > { %v2763_v60 = vpop.f32.mrf.mxu0  ;;  %v2765_v22 = vpop.f32.mrf.mxu1 }
 0x145   : > { %v2767_v31 = vpop.f32.mrf.mxu0  ;;  %v2769_v37 = vpop.f32.mrf.mxu1 }
 0x147   : > { %v2771_v39 = vpop.f32.mrf.mxu0  ;;  %v2773_v7 = vpop.f32.mrf.mxu1 }
 0x148   : > { %2926 = vst [vmem:[#allocation9_spill] sm:$0xff] %v2771_v39  ;;  %2927 = vst [vmem:[#allocation10_spill] sm:$0xff] %v2773_v7  ;;  %v1634_v7 = vadd.f32 %v1633_v57, %v1632_v30 }
 0x149   : > { %v2775_v11 = vpop.f32.mrf.mxu0  ;;  %v2777_v24 = vpop.f32.mrf.mxu1 }
 0x14a   : > { %2928 = vst [vmem:[#allocation11_spill] sm:$0xff] %v2775_v11  ;;  %2929 = vst [vmem:[#allocation12_spill] sm:$0xff] %v2777_v24  ;;  %v1631_v24 = vadd.f32 %v1630_v17, %v1629_v63  ;;  %v1711_v17 = vadd.f32 %v1710_v23, %v2757_v12 }
 0x14b   : > { %v2779_v16 = vpop.f32.mrf.mxu0  ;;  %v2781_v56 = vpop.f32.mrf.mxu1 }
 0x14c   : > { %2930 = vst [vmem:[#allocation13_spill] sm:$0xff] %v2781_v56  ;;  %v1628_v56 = vadd.f32 %v1627_v50, %v1626_v21  ;;  %v1708_v21 = vadd.f32 %v1707_v28, %v2755_v48  ;;  %v896_v63 = vadd.f32 %v1631_v24, %v2725_v62  ;;  %v1717_v28 = vadd.f32 %v2761_v54, %v2759_v0 }
 0x14d   : > { %v2783_v9 = vpop.f32.mrf.mxu0  ;;  %v2785_v19 = vpop.f32.mrf.mxu1 }
 0x14e   : > { %2931 = vst [vmem:[#allocation14_spill] sm:$0xff] %v2785_v19  ;;  %v1625_v19 = vadd.f32 %v1624_v5, %v1623_v49  ;;  %v891_v5 = vadd.f32 %v1628_v56, %v2723_v14  ;;  %v1041_v0 = vadd.f32 %v1711_v17, %v896_v63  ;;  %v1646_v54 = vadd.f32 %v2783_v9, %v2779_v16 }
 0x14f   : > { %v1647_v33 = vpop.f32.mrf.mxu0  ;;  %v1727_v38 = vpop.f32.mrf.mxu1 }
 0x150   : > { %v886_v49 = vadd.f32 %v1625_v19, %v2721_v52 }
 0x151   : > { %v1648_v40 = vpop.f32.mrf.mxu0  ;;  %v1728_v47 = vpop.f32.mrf.mxu1 }
 0x152   : > { %v1649_v50 = vadd.f32 %v1648_v40, %v1647_v33  ;;  %v1729_v23 = vadd.f32 %v1728_v47, %v1727_v38  ;;  %v2937_v33 = vld [vmem:[#allocation2_spill] sm:$0xff]  ;;  %v2938_v40 = vld [vmem:[#allocation9_spill] sm:$0xff] }
 0x153   : > { %v1650_v51 = vpop.f32.mrf.mxu0  ;;  %v1730_v36 = vpop.f32.mrf.mxu1 }
 0x154   : > { %v926_v12 = vadd.f32 %v1649_v50, %v2737_v53 }
 0x155   : > { %v1651_v10 = vpop.f32.mrf.mxu0  ;;  %v1731_v13 = vpop.f32.mrf.mxu1 }
 0x156   : > { %v1732_v14 = vadd.f32 %v1731_v13, %v1730_v36  ;;  %v1071_v38 = vadd.f32 %v1729_v23, %v926_v12  ;;  %v2942_v36 = vld [vmem:[#allocation13_spill] sm:$0xff] }
 0x157   : > { %v1653_v6 = vpop.f32.mrf.mxu0  ;;  %v1733_v15 = vpop.f32.mrf.mxu1 }
 0x159   : > { %v1654_v32 = vpop.f32.mrf.mxu0  ;;  %v1734_v25 = vpop.f32.mrf.mxu1 }
 0x15a   : > { %v1735_v56 = vadd.f32 %v1734_v25, %v1733_v15 }
 0x15b   : > { %v1656_v29 = vpop.f32.mrf.mxu0  ;;  %v1736_v42 = vpop.f32.mrf.mxu1 }
 0x15d   : > { %v1657_v45 = vpop.f32.mrf.mxu0  ;;  %v1737_v46 = vpop.f32.mrf.mxu1 }
 0x15f   : > { %v2787_v27 = vpop.f32.mrf.mxu0  ;;  %v2789_v2 = vpop.f32.mrf.mxu1 }
 0x160   : > { %2932 = vst [vmem:[#allocation15_spill] sm:$0xff] %v2787_v27  ;;  %2933 = vst [vmem:[#allocation16_spill] sm:$0xff] %v2789_v2  ;;  %v1652_v2 = vadd.f32 %v1651_v10, %v1650_v51  ;;  %v2943_v10 = vld [vmem:[#allocation14_spill] sm:$0xff] }
 0x161   : > { %v2791_v34 = vpop.f32.mrf.mxu0  ;;  %v2793_v26 = vpop.f32.mrf.mxu1  ;;  %v1726_v13 = vadd.f32 %v2943_v10, %v2942_v36 }
 0x162   : > { %2934 = vst [vmem:[#allocation17_spill] sm:$0xff] %v2791_v34  ;;  %2935 = vst [vmem:[#allocation18_spill] sm:$0xff] %v2793_v26  ;;  %v1705_v34 = vadd.f32 %v1704_v18, %v2751_v55  ;;  %v1637_v26 = vadd.f32 %v1636_v4, %v1635_v59  ;;  %v901_v55 = vadd.f32 %v1634_v7, %v2727_v1 }
 0x163   : > { %v1662_v58 = vpop.f32.mrf.mxu0  ;;  %v2796_v3 = vpop.f32.mrf.mxu1  ;;  %v1714_v18 = vadd.f32 %v1713_v43, %v1712_v35  ;;  %v931_v52 = vadd.f32 %v1652_v2, %v2739_v41  ;;  %v1655_v59 = vadd.f32 %v1654_v32, %v1653_v6  ;;  %v1658_v4 = vadd.f32 %v1657_v45, %v1656_v29 }
 0x164   : > { %v906_v48 = vadd.f32 %v1637_v26, %v2729_v44  ;;  %v1640_v1 = vadd.f32 %v2767_v31, %v2763_v60  ;;  %v1031_v35 = vadd.f32 %v1705_v34, %v886_v49  ;;  %v1720_v41 = vadd.f32 %v2769_v37, %v2765_v22 }
 0x165   : > { %v1663_v27 = vpop.f32.mrf.mxu0  ;;  %v2802_v11 = vpop.f32.mrf.mxu1  ;;  %v1036_v26 = vadd.f32 %v1708_v21, %v891_v5  ;;  %v1046_v43 = vadd.f32 %v1714_v18, %v901_v55  ;;  %v936_v7 = vadd.f32 %v1655_v59, %v2741_v20  ;;  %v1076_v60 = vadd.f32 %v1732_v14, %v931_v52  ;;  %v2947_v21 = vld [vmem:[#allocation6_spill] sm:$0xff] }
 0x166   : > { %v941_v53 = vadd.f32 %v1658_v4, %v2743_v8  ;;  %v1738_v31 = vadd.f32 %v1737_v46, %v1736_v42  ;;  %v1664_v19 = vadd.f32 %v1663_v27, %v1662_v58  ;;  %v1051_v37 = vadd.f32 %v1717_v28, %v906_v48  ;;  %v2939_v8 = vld [vmem:[#allocation11_spill] sm:$0xff]  ;;  %v2940_v58 = vld [vmem:[#allocation10_spill] sm:$0xff]  ;;  %v2941_v27 = vld [vmem:[#allocation12_spill] sm:$0xff] }
 0x167   : > { %v2805_v39 = vpop.f32.mrf.mxu0  ;;  %v2807_v61 = vpop.f32.mrf.mxu1  ;;  %v911_v16 = vadd.f32 %v1640_v1, %v2937_v33  ;;  %v1643_v47 = vadd.f32 %v2939_v8, %v2938_v40  ;;  %v2849_v51 = vadd.f32 %v2941_v27, %v2940_v58  ;;  %v2944_v6 = vld [vmem:[#allocation15_spill] sm:$0xff]  ;;  %v2946_v42 = vld [vmem:[#allocation4_spill] sm:$0xff]  ;;  %v1081_v5 = vadd.f32 %v1735_v56, %v936_v7  ;;  %v2948_v4 = vld [vmem:[#allocation5_spill] sm:$0xff] }
 0x168   : > { %v921_v45 = vadd.f32 %v1646_v54, %v2946_v42  ;;  %v951_v50 = vadd.f32 %v1664_v19, %v2947_v21  ;;  %v1744_v63 = vadd.f32 %v2802_v11, %v2796_v3  ;;  %v1086_v18 = vadd.f32 %v1738_v31, %v941_v53  ;;  %v2949_v12 = vld [vmem:[#allocation16_spill] sm:$0xff] }
 0x169   : > { %v1666_v30 = vpop.f32.mrf.mxu0  ;;  %v2819_v57 = vpop.f32.mrf.mxu1  ;;  %v2945_v15 = vld [vmem:[#allocation17_spill] sm:$0xff]  ;;  %v2950_v23 = vld [vmem:[#allocation18_spill] sm:$0xff]  ;;  %v1056_v56 = vadd.f32 %v1720_v41, %v911_v16  ;;  %v2952_v53 = vld [vmem:[#allocation8_spill] sm:$0xff] }
 0x16a   : > { %v1661_v32 = vadd.f32 %v2945_v15, %v2944_v6  ;;  %v1667_v3 = vadd.f32 %v1666_v30, %v2805_v39  ;;  %v1096_v30 = vadd.f32 %v1744_v63, %v951_v50  ;;  %v1066_v41 = vadd.f32 %v1726_v13, %v921_v45  ;;  %v2953_v16 = vld [vmem:[#allocation7_spill] sm:$0xff] }
 0x16b   : > { %v1668_v62 = vpop.f32.mrf.mxu0  ;;  %v2825_v24 = vpop.f32.mrf.mxu1 }
 0x16c   : > { %v946_v1 = vadd.f32 %v1661_v32, %v2948_v4 }
 0x16d   : > { %v1669_v2 = vpop.f32.mrf.mxu0  ;;  %v1749_v44 = vpop.f32.mrf.mxu1 }
 0x16e   : > { %v1670_v17 = vadd.f32 %v1669_v2, %v1668_v62  ;;  %v1750_v19 = vadd.f32 %v1749_v44, %v2825_v24 }
 0x16f   : > { %v1817_v34 = vpop.f32.mrf.mxu0  ;;  %v1829_v22 = vpop.f32.mrf.mxu1 }
 0x170   : > { %v1181_v9 = vadd.f32 %v1817_v34, %v1036_v26  ;;  %v2843_v20 = vadd.f32 %v1829_v22, %v1076_v60  ;;  %v961_v31 = vadd.f32 %v1670_v17, %v2952_v53 }
 0x171   : > { %v1175_v25 = vpop.f32.mrf.mxu0  ;;  %v1215_v29 = vpop.f32.mrf.mxu1 }
 0x172   : > { %1255 = vst [vmem:[%s2840_s26 + $0x8] sm:$0xff] %v1181_v9  ;;  %1263 = vst [vmem:[%s2840_s26 + $0x48] sm:$0xff] %v2843_v20  ;;  %v1176_v46 = vadd.f32 %v1175_v25, %v1031_v35  ;;  %v2859_v49 = vadd.f32 %v1215_v29, %v1071_v38  ;;  %v1292_v14 = vmul.f32 %v1181_v9, %v1181_v9 }
 0x173   : > { %v1820_v55 = vpop.f32.mrf.mxu0  ;;  %v1832_v52 = vpop.f32.mrf.mxu1  ;;  %v1741_v35 = vadd.f32 %v2950_v23, %v2949_v12  ;;  %v1747_v38 = vadd.f32 %v2819_v57, %v2807_v61  ;;  %v1106_v13 = vadd.f32 %v1750_v19, %v961_v31 }
 0x174   : > { %1254 = vst [vmem:[%s2840_s26] sm:$0xff] %v1176_v46  ;;  %v1270_v59 = vadd.f32 %v1181_v9, %v1176_v46  ;;  %v1291_v48 = vmul.f32 %v1176_v46, %v1176_v46  ;;  %1262 = vst [vmem:[%s2840_s26 + $0x40] sm:$0xff] %v2859_v49  ;;  %v1191_v28 = vadd.f32 %v1820_v55, %v1046_v43  ;;  %v2951_v43 = vld [vmem:[#allocation3_spill] sm:$0xff] }
 0x175   : > { %v2871_v11 = vadd.f32 %v1832_v52, %v1086_v18  ;;  %v1185_v62 = vpop.f32.mrf.mxu0  ;;  %v1225_v2 = vpop.f32.mrf.mxu1  ;;  %v916_v60 = vadd.f32 %v1643_v47, %v2951_v43  ;;  %v956_v9 = vadd.f32 %v1667_v3, %v2953_v16  ;;  %v1091_v40 = vadd.f32 %v1741_v35, %v946_v1 }
 0x176   : > { %v1307_v26 = vadd.f32 %v1292_v14, %v1291_v48  ;;  %1257 = vst [vmem:[%s2840_s26 + $0x18] sm:$0xff] %v1191_v28  ;;  %v1186_v54 = vadd.f32 %v1185_v62, %v1041_v0  ;;  %v2874_v7 = vadd.f32 %v1225_v2, %v1081_v5  ;;  %v1294_v47 = vmul.f32 %v1191_v28, %v1191_v28 }
 0x177   : > { %1265 = vst [vmem:[%s2840_s26 + $0x58] sm:$0xff] %v2871_v11  ;;  %v1823_v39 = vpop.f32.mrf.mxu0  ;;  %v1835_v34 = vpop.f32.mrf.mxu1  ;;  %v1061_v32 = vadd.f32 %v2849_v51, %v916_v60  ;;  %v1101_v45 = vadd.f32 %v1747_v38, %v956_v9  ;;  %v1299_v48 = vmul.f32 %v2859_v49, %v2859_v49  ;;  %v1300_v1 = vmul.f32 %v2843_v20, %v2843_v20 }
 0x178   : > { %1256 = vst [vmem:[%s2840_s26 + $0x10] sm:$0xff] %v1186_v54  ;;  %v1271_v22 = vadd.f32 %v1270_v59, %v1186_v54  ;;  %v1293_v33 = vmul.f32 %v1186_v54, %v1186_v54  ;;  %1264 = vst [vmem:[%s2840_s26 + $0x50] sm:$0xff] %v2874_v7  ;;  %v1201_v0 = vadd.f32 %v1823_v39, %v1056_v56 }
 0x179   : > { %v1241_v24 = vadd.f32 %v1835_v34, %v1096_v30  ;;  %v1195_v44 = vpop.f32.mrf.mxu0  ;;  %v1235_v8 = vpop.f32.mrf.mxu1  ;;  %v1301_v35 = vmul.f32 %v2874_v7, %v2874_v7  ;;  %v1302_v2 = vmul.f32 %v2871_v11, %v2871_v11 }
 0x17a   : > { %v1308_v58 = vadd.f32 %v1307_v26, %v1293_v33  ;;  %1259 = vst [vmem:[%s2840_s26 + $0x28] sm:$0xff] %v1201_v0  ;;  %v1196_v27 = vadd.f32 %v1195_v44, %v1051_v37  ;;  %v1272_v36 = vadd.f32 %v1271_v22, %v1191_v28  ;;  %v1236_v10 = vadd.f32 %v1235_v8, %v1091_v40 }
 0x17b   : > { %1267 = vst [vmem:[%s2840_s26 + $0x68] sm:$0xff] %v1241_v24  ;;  %v1826_v6 = vpop.f32.mrf.mxu0  ;;  %v1838_v15 = vpop.f32.mrf.mxu1  ;;  %v1296_v5 = vmul.f32 %v1201_v0, %v1201_v0  ;;  %v1304_v60 = vmul.f32 %v1241_v24, %v1241_v24 }
 0x17c   : > { %1258 = vst [vmem:[%s2840_s26 + $0x20] sm:$0xff] %v1196_v27  ;;  %v1273_v61 = vadd.f32 %v1272_v36, %v1196_v27  ;;  %v1295_v57 = vmul.f32 %v1196_v27, %v1196_v27  ;;  %v1309_v25 = vadd.f32 %v1308_v58, %v1294_v47  ;;  %v1211_v29 = vadd.f32 %v1826_v6, %v1066_v41 }
 0x17d   : > { %1266 = vst [vmem:[%s2840_s26 + $0x60] sm:$0xff] %v1236_v10  ;;  %v1251_v42 = vadd.f32 %v1838_v15, %v1106_v13  ;;  %v1205_v37 = vpop.f32.mrf.mxu0  ;;  %v1245_v46 = vpop.f32.mrf.mxu1 }
 0x17e   : > { %v1310_v21 = vadd.f32 %v1309_v25, %v1295_v57  ;;  %1261 = vst [vmem:[%s2840_s26 + $0x38] sm:$0xff] %v1211_v29  ;;  %v1206_v50 = vadd.f32 %v1205_v37, %v1061_v32  ;;  %v1274_v63 = vadd.f32 %v1273_v61, %v1201_v0  ;;  %v1246_v51 = vadd.f32 %v1245_v46, %v1101_v45 }
 0x17f   : > { %1269 = vst [vmem:[%s2840_s26 + $0x78] sm:$0xff] %v1251_v42  ;;  %v1298_v52 = vmul.f32 %v1211_v29, %v1211_v29  ;;  %v1306_v30 = vmul.f32 %v1251_v42, %v1251_v42 }
 0x180   : > { %1260 = vst [vmem:[%s2840_s26 + $0x30] sm:$0xff] %v1206_v50  ;;  %v1275_v17 = vadd.f32 %v1274_v63, %v1206_v50  ;;  %v1297_v55 = vmul.f32 %v1206_v50, %v1206_v50  ;;  %v1311_v18 = vadd.f32 %v1310_v21, %v1296_v5  ;;  %1268 = vst [vmem:[%s2840_s26 + $0x70] sm:$0xff] %v1246_v51 }
 0x181   : > { %v1305_v19 = vmul.f32 %v1246_v51, %v1246_v51 }
 0x182   : > { %v1276_v14 = vadd.f32 %v1275_v17, %v1211_v29  ;;  %v1312_v59 = vadd.f32 %v1311_v18, %v1297_v55 }
 0x184   : > { %v1277_v28 = vadd.f32 %v1276_v14, %v2859_v49  ;;  %v1313_v4 = vadd.f32 %v1312_v59, %v1298_v52  ;;  %v1303_v49 = vmul.f32 %v1236_v10, %v1236_v10 }
 0x186   : > { %v1278_v12 = vadd.f32 %v1277_v28, %v2843_v20  ;;  %v1314_v23 = vadd.f32 %v1313_v4, %v1299_v48 }
 0x188   : > { %v1315_v3 = vadd.f32 %v1314_v23, %v1300_v1  ;;  %v1279_v62 = vadd.f32 %v1278_v12, %v2874_v7 }
 0x18a   : > { %v1280_v26 = vadd.f32 %v1279_v62, %v2871_v11  ;;  %v1316_v54 = vadd.f32 %v1315_v3, %v1301_v35 }
 0x18c   : > { %v1281_v56 = vadd.f32 %v1280_v26, %v1236_v10  ;;  %v1317_v43 = vadd.f32 %v1316_v54, %v1302_v2 }
 0x18e   : > { %v1282_v53 = vadd.f32 %v1281_v56, %v1241_v24  ;;  %v1318_v31 = vadd.f32 %v1317_v43, %v1303_v49 }
 0x190   : > { %v1283_v20 = vadd.f32 %v1282_v53, %v1246_v51  ;;  %v1319_v39 = vadd.f32 %v1318_v31, %v1304_v60 }
 0x192   : > { %v1284_v34 = vadd.f32 %v1283_v20, %v1251_v42  ;;  %v1320_v22 = vadd.f32 %v1319_v39, %v1305_v19 }
 0x194   : > { %v1285_v7 = vrot.slane %v1284_v34, 4  ;;  %v1321_v33 = vadd.f32 %v1320_v22, %v1306_v30 }
 0x196   : > { %v1286_v0 = vadd.f32 %v1285_v7, %v1284_v34  ;;  %v1322_v41 = vrot.slane %v1321_v33, 4 }
 0x198   : > { %v1287_v16 = vrot.slane %v1286_v0, 2  ;;  %v1323_v11 = vadd.f32 %v1322_v41, %v1321_v33 }
 0x19a   : > { %v1288_v9 = vadd.f32 %v1287_v16, %v1286_v0  ;;  %v1324_v38 = vrot.slane %v1323_v11, 2 }
 0x19c   : > { %v1289_v44 = vrot.slane %v1288_v9, 1  ;;  %v1325_v40 = vadd.f32 %v1324_v38, %v1323_v11 }
 0x19e   : > { %v1326_v24 = vrot.slane %v1325_v40, 1  ;;  %v1290_v8 = vadd.f32 %v1289_v44, %v1288_v9 }
 0x1a0   : > { %v1327_v47 = vadd.f32 %v1326_v24, %v1325_v40 }
 0x1a2   : > { %v1329_v58 = vsel %vm1328_vm2, %v1290_v8, %v1327_v47 }
 0x1a3   : > { %v1331_v27 = vsel %vm1330_vm3, %v1329_v58, 0.0 }
 0x1a4   : > { %1332 = vst [vmem:[%s182_s30] sm:$0xff] %v1331_v27 }
 0x1a5 PF: > { %s14_s12 = sadd.s32 1, %s1886_s12  }
 0x1a6   : > { %p11_p5 = scmp.ge.s32.totalorder %s14_s12, 6  }
 0x1a8   :  { %13 = sbr.rel (!%p11_p5) target bundleno = 1 (0x1), region = 70 }

</bundles_post_ra>
